<compile_context>
chip_gen: v7x
topology: tpu7x:2x2x1
jax: 0.10.0
libtpu: 0.0.40
codegen_flags: <defaults>
</compile_context>

<pallas_src>
import functools

import jax
import jax.numpy as jnp
from jax import lax
from jax.experimental import pallas as pl
from jax.experimental.pallas import tpu as pltpu


# ----------------------------------------------------------------------------
# Pallas kernel: one (batch, row-tile, cout-tile) block per grid step.
# ----------------------------------------------------------------------------
def _repvgg_kernel(x_ref, w_ref, b_ref, o_ref, xcat_ref, *, TH, W, Cin, TC):
    # x_ref   : (1, 1, TH+2, W+2, Cin)  halo'd, zero-padded input row slab
    # w_ref   : (3, 3*Cin, TC)          re-param 3x3 weights, kw packed into K
    # b_ref   : (1, TC)                 fused bias (f32)
    # o_ref   : (1, 1, TH*W, TC)        output slab, lane/sublane dense
    # xcat_ref: ((TH+2)*W, 3*Cin)       cached kw-packed im2col slab (VMEM scratch)
    M = TH * W
    K = 3 * Cin

    # Rebuild the im2col slab only when the input row tile changes (the Cout grid
    # axis is innermost and "arbitrary"): amortized over Cout/TC output tiles.
    @pl.when(pl.program_id(2) == 0)
    def _():
        xs = x_ref[0, 0]                                       # (TH+2, W+2, Cin)
        xcat = jnp.concatenate(
            [xs[:, 0:W, :], xs[:, 1:W + 1, :], xs[:, 2:W + 2, :]], axis=-1
        )                                                      # (TH+2, W, 3*Cin)
        xcat_ref[...] = xcat.reshape((TH + 2) * W, K)

    # 3 MXU matmuls with K = 3*Cin; kh row offsets are plain row-window slices of
    # the cached slab.  Fused accumulation (no VMEM accumulator round trips).
    acc = jnp.dot(xcat_ref[pl.ds(0, M), :], w_ref[0],
                  preferred_element_type=jnp.float32)
    acc = acc + jnp.dot(xcat_ref[pl.ds(W, M), :], w_ref[1],
                        preferred_element_type=jnp.float32)
    acc = acc + jnp.dot(xcat_ref[pl.ds(2 * W, M), :], w_ref[2],
                        preferred_element_type=jnp.float32)

    # Bias + ReLU in f32 (v5e VPU has no bf16), store in the output dtype.
    o_ref[0, 0] = jnp.maximum(acc + b_ref[...], 0.0).astype(o_ref.dtype)


# ----------------------------------------------------------------------------
# Hardware-aware helpers.
# ----------------------------------------------------------------------------
def _vmem_budget_bytes():
    """Tile/scoped-VMEM budget: physical capacity minus headroom, capped."""
    cap = 64 * 1024 * 1024                      # safe fallback (v7x per-TC VMEM)
    try:
        cap = int(pltpu.get_tpu_info().vmem_capacity_bytes)
    except Exception:
        pass
    return max(min(cap - 16 * 1024 * 1024, 100 * 1024 * 1024), 32 * 1024 * 1024)


def _prefer_wide_lanes():
    """True on 256-wide-MXU parts (v6e/v7x); False on v5e and older (128-wide)."""
    try:
        kind = jax.devices()[0].device_kind.lower()
        return not any(v in kind for v in ("v2", "v3", "v4", "v5"))
    except Exception:
        return True


def _vmem_footprint_bytes(TH, W, Cin, TC, act_bytes):
    Wp = W + 2
    in_blk = (TH + 2) * Wp * Cin * act_bytes
    w_blk = 3 * 3 * Cin * TC * act_bytes
    out_blk = TH * W * TC * act_bytes
    xcat = (TH + 2) * W * 3 * Cin * act_bytes
    acc = TH * W * TC * 4                       # f32 accumulation temporaries
    # input/weight/output blocks are double-buffered by the pipeline.
    return 2 * (in_blk + w_blk + out_blk) + xcat + acc


# ----------------------------------------------------------------------------
# Wrapper: NCHW in / NCHW out, RepVGG re-param + BN folding, tiling, bf16 cast.
# ----------------------------------------------------------------------------
def repvgg_block_forward(x_nchw, params, *, block_h=None, block_cout=None,
                         compute_dtype=jnp.bfloat16, out_dtype=jnp.bfloat16):
    """RepVGGBlock forward (stride=1, padding=1, groups=1, k=3, SE=Identity, eval BN).

    x_nchw: (B, Cin, H, W).  Returns (B, Cout, H, W) in `out_dtype`.
    """
    B, Cin, H, W = x_nchw.shape
    eps = 1e-5

    w3, w1 = params["w3"], params["w1"]
    # The single-conv re-parameterization is only valid for this configuration.
    assert w3.shape[1:] == (Cin, 3, 3), "expect 3x3 conv, groups=1"
    assert w1.shape[1:] == (Cin, 1, 1), "expect 1x1 conv, groups=1"

    # ---- fold BN (eval mode) into each conv branch, in f32 ------------------
    def fuse_conv_bn(w_oihw, gamma, beta, mean, var):
        t = gamma / jnp.sqrt(var + eps)
        return w_oihw * t[:, None, None, None], beta - mean * t

    w3f, b3 = fuse_conv_bn(w3, params["bn3_gamma"], params["bn3_beta"],
                           params["bn3_mean"], params["bn3_var"])
    w1f, b1 = fuse_conv_bn(w1, params["bn1_gamma"], params["bn1_beta"],
                           params["bn1_mean"], params["bn1_var"])
    Cout = w3f.shape[0]

    # ---- RepVGG re-param: fold 1x1 and identity-BN into the 3x3 center tap --
    w_eq = w3f.at[:, :, 1, 1].add(w1f[:, :, 0, 0])
    b_eq = b3 + b1
    if Cin == Cout and "bni_gamma" in params:
        t_i = params["bni_gamma"] / jnp.sqrt(params["bni_var"] + eps)
        w_eq = w_eq.at[jnp.arange(Cout), jnp.arange(Cin), 1, 1].add(t_i)
        b_eq = b_eq + (params["bni_beta"] - params["bni_mean"] * t_i)

    # kernel-facing layouts: (kh, kw*Cin + ci, co); cast only at the very end.
    w_hwio = jnp.transpose(w_eq, (2, 3, 1, 0))                 # (3, 3, Cin, Cout)
    wk = w_hwio.reshape(3, 3 * Cin, Cout).astype(compute_dtype)
    bias = b_eq.reshape(1, Cout).astype(jnp.float32)

    # ---- tiling --------------------------------------------------------------
    act_bytes = jnp.dtype(compute_dtype).itemsize
    budget = _vmem_budget_bytes()

    if block_cout is not None:
        assert Cout % block_cout == 0
        TC = block_cout
    elif _prefer_wide_lanes() and Cout % 256 == 0:
        TC = 256                                   # v6e / v7x: 2x256^2 MXU
    elif Cout % 128 == 0:
        TC = 128                                   # v5e: 4x128^2 MXU
    else:
        TC = Cout

    divisors = [d for d in range(H, 0, -1) if H % d == 0]
    if block_h is not None:
        assert H % block_h == 0
        TH = block_h
    else:
        # Target M = TH*W around 512-2048; full height for small feature maps.
        TH = next((d for d in divisors if d * W <= 2048), 1)
    # Shrink to the VMEM budget if needed (row tile first, then narrower TC).
    while _vmem_footprint_bytes(TH, W, Cin, TC, act_bytes) > budget:
        smaller = [d for d in divisors if d < TH]
        if smaller:
            TH = smaller[0]
        elif TC > 128 and TC % 128 == 0:
            TC = 128
        else:
            break

    Tr, Tc = H // TH, Cout // TC
    Wp = W + 2
    M = TH * W

    # ---- NCHW -> NHWC, zero pad, (optional) halo'd row slabs, cast -----------
    # TODO(synk): in a full network keep activations NHWC bf16 across layers and
    #             fuse the padding into the producer to avoid these HBM round trips.
    x_nhwc = jnp.transpose(x_nchw, (0, 2, 3, 1))
    x_pad = jnp.pad(x_nhwc, ((0, 0), (1, 1), (1, 1), (0, 0))).astype(compute_dtype)
    if Tr == 1:
        x_tiles = x_pad[:, None]                   # (B, 1, H+2, Wp, Cin), free
    else:
        # TODO(synk): replace this gather with in-kernel streamed halo DMA.
        row_idx = jnp.arange(Tr)[:, None] * TH + jnp.arange(TH + 2)[None, :]
        x_tiles = x_pad[:, row_idx]                # (B, Tr, TH+2, Wp, Cin)

    kernel = functools.partial(_repvgg_kernel, TH=TH, W=W, Cin=Cin, TC=TC)

    out = pl.pallas_call(
        kernel,
        out_shape=jax.ShapeDtypeStruct((B, Tr, M, Cout), out_dtype),
        grid_spec=pltpu.PrefetchScalarGridSpec(
            num_scalar_prefetch=0,
            grid=(B, Tr, Tc),
            in_specs=[
                pl.BlockSpec((1, 1, TH + 2, Wp, Cin),
                             lambda b, r, c: (b, r, 0, 0, 0)),
                pl.BlockSpec((3, 3 * Cin, TC), lambda b, r, c: (0, 0, c)),
                pl.BlockSpec((1, TC), lambda b, r, c: (0, c)),
            ],
            out_specs=pl.BlockSpec((1, 1, M, TC), lambda b, r, c: (b, r, 0, c)),
            scratch_shapes=[pltpu.VMEM(((TH + 2) * W, 3 * Cin), compute_dtype)],
        ),
        compiler_params=pltpu.CompilerParams(
            # Cout axis is innermost and "arbitrary" so the cached im2col slab
            # (built at c == 0) is legally reused across Cout tiles; batch and
            # row-tile axes stay "parallel" for megacore sharding.
            dimension_semantics=("parallel", "parallel", "arbitrary"),
            vmem_limit_bytes=budget,
        ),
    )(x_tiles, wk, bias)

    # (B, Tr, TH*W, Cout) -> (B, H, W, Cout): contiguity-preserving reshape (free),
    # then back to NCHW (PyTorch convention).
    out_nhwc = out.reshape(B, H, W, Cout)
    return jnp.transpose(out_nhwc, (0, 3, 1, 2))


# ----------------------------------------------------------------------------
# Pure-JAX reference (training-structure forward, for verification only).
# ----------------------------------------------------------------------------
def repvgg_block_reference(x_nchw, params):
    eps = 1e-5

    def bn(y, gamma, beta, mean, var):
        inv = gamma / jnp.sqrt(var + eps)
        return (y - mean[None, :, None, None]) * inv[None, :, None, None] \
            + beta[None, :, None, None]

    def conv(x, w_oihw, pad):
        return lax.conv_general_dilated(
            x, w_oihw, window_strides=(1, 1),
            padding=[(pad, pad), (pad, pad)],
            dimension_numbers=("NCHW", "OIHW", "NCHW"))

    y3 = bn(conv(x_nchw, params["w3"], 1), params["bn3_gamma"],
            params["bn3_beta"], params["bn3_mean"], params["bn3_var"])
    y1 = bn(conv(x_nchw, params["w1"], 0), params["bn1_gamma"],
            params["bn1_beta"], params["bn1_mean"], params["bn1_var"])
    Cin, Cout = x_nchw.shape[1], params["w3"].shape[0]
    yid = bn(x_nchw, params["bni_gamma"], params["bni_beta"],
             params["bni_mean"], params["bni_var"]) if Cin == Cout else 0.0
    return jnp.maximum(y3 + y1 + yid, 0.0)


# ----------------------------------------------------------------------------
def make_params(key, in_channels, out_channels):
    ks = jax.random.split(key, 12)
    p = {
        "w3": 0.1 * jax.random.normal(ks[0], (out_channels, in_channels, 3, 3),
                                      jnp.float32),
        "w1": 0.1 * jax.random.normal(ks[1], (out_channels, in_channels, 1, 1),
                                      jnp.float32),
        "bn3_gamma": 1.0 + 0.1 * jax.random.normal(ks[2], (out_channels,)),
        "bn3_beta": 0.1 * jax.random.normal(ks[3], (out_channels,)),
        "bn3_mean": 0.1 * jax.random.normal(ks[4], (out_channels,)),
        "bn3_var": 0.5 + jax.random.uniform(ks[5], (out_channels,)),
        "bn1_gamma": 1.0 + 0.1 * jax.random.normal(ks[6], (out_channels,)),
        "bn1_beta": 0.1 * jax.random.normal(ks[7], (out_channels,)),
        "bn1_mean": 0.1 * jax.random.normal(ks[8], (out_channels,)),
        "bn1_var": 0.5 + jax.random.uniform(ks[9], (out_channels,)),
    }
    if in_channels == out_channels:
        ki = jax.random.split(ks[10], 4)
        p["bni_gamma"] = 1.0 + 0.1 * jax.random.normal(ki[0], (in_channels,))
        p["bni_beta"] = 0.1 * jax.random.normal(ki[1], (in_channels,))
        p["bni_mean"] = 0.1 * jax.random.normal(ki[2], (in_channels,))
        p["bni_var"] = 0.5 + jax.random.uniform(ki[3], (in_channels,))
    return jax.tree.map(lambda a: a.astype(jnp.float32), p)


if __name__ == "__main__":
    key = jax.random.PRNGKey(0)
    k_x, k_p = jax.random.split(key)

    B, C, H, W = 2, 4, 16, 16            # in_channels = out_channels = 4
    x = jax.random.normal(k_x, (B, C, H, W), jnp.float32)   # NCHW like PyTorch
    params = make_params(k_p, C, C)

    ref = jax.block_until_ready(repvgg_block_reference(x, params))

    # Exact path (f32 compute/output): tight tolerance, verifies the re-param math.
    out_f32 = jax.block_until_ready(
        repvgg_block_forward(x, params, compute_dtype=jnp.float32,
                             out_dtype=jnp.float32))
    assert out_f32.shape == (B, C, H, W)
    err_f32 = float(jnp.max(jnp.abs(out_f32 - ref)))
    assert err_f32 < 1e-3, f"f32 path max_err={err_f32}"

    # Fast path (bf16 compute and output): loosened tolerance.
    out = jax.block_until_ready(repvgg_block_forward(x, params))
    assert out.shape == (B, C, H, W)
    out32 = out.astype(jnp.float32)
    max_err = float(jnp.max(jnp.abs(out32 - ref)))
    rel_l2 = float(jnp.linalg.norm(out32 - ref) / (jnp.linalg.norm(ref) + 1e-12))
    assert max_err < 1.5e-1 and rel_l2 < 3e-2, f"max_err={max_err} rel_l2={rel_l2}"

    print("KERNEL_OK")
</pallas_src>

<mosaic_0001>
module attributes {stable_mosaic.version = 11 : i64} {
  func.func @_repvgg_kernel(%arg0: i32, %arg1: i32, %arg2: i32, %arg3: memref<1x1x18x18x4xf32, #tpu.memory_space<vmem>>, %arg4: memref<3x12x4xf32, #tpu.memory_space<vmem>>, %arg5: memref<1x4xf32, #tpu.memory_space<vmem>>, %arg6: memref<1x1x256x4xf32, #tpu.memory_space<vmem>>, %arg7: memref<288x12xf32, #tpu.memory_space<vmem>>) attributes {dimension_semantics = [#tpu.dimension_semantics<parallel>, #tpu.dimension_semantics<parallel>, #tpu.dimension_semantics<arbitrary>], iteration_bounds = array<i64: 2, 1, 1>, scalar_prefetch = 0 : i64, scratch_operands = 1 : i64, tpu.core_type = #tpu.core_type<tc>, window_params = [{transform_indices = @transform_0, window_bounds = array<i64: 1, 1, 18, 18, 4>}, {transform_indices = @transform_1, window_bounds = array<i64: 3, 12, 4>}, {transform_indices = @transform_2, window_bounds = array<i64: 1, 4>}, {transform_indices = @transform_3, window_bounds = array<i64: 1, 1, 256, 4>}]} {
    %c0_i32 = arith.constant 0 : i32
    %0 = arith.cmpi eq, %arg2, %c0_i32 : i32
    %1 = arith.extui %0 : i1 to i32
    %c0_i32_0 = arith.constant 0 : i32
    %2 = arith.cmpi ne, %1, %c0_i32_0 : i32
    scf.if %2 {
      %c0_20 = arith.constant 0 : index
      %c0_21 = arith.constant 0 : index
      %c0_22 = arith.constant 0 : index
      %c0_23 = arith.constant 0 : index
      %c0_24 = arith.constant 0 : index
      %25 = vector.load %arg3[%c0_20, %c0_21, %c0_22, %c0_23, %c0_24] : memref<1x1x18x18x4xf32, #tpu.memory_space<vmem>>, vector<1x1x18x18x4xf32>
      %26 = vector.shape_cast %25 : vector<1x1x18x18x4xf32> to vector<18x18x4xf32>
      %27 = vector.extract_strided_slice %26 {offsets = [0, 0, 0], sizes = [18, 16, 4], strides = [1, 1, 1]} : vector<18x18x4xf32> to vector<18x16x4xf32>
      %28 = vector.extract_strided_slice %26 {offsets = [0, 1, 0], sizes = [18, 16, 4], strides = [1, 1, 1]} : vector<18x18x4xf32> to vector<18x16x4xf32>
      %29 = vector.extract_strided_slice %26 {offsets = [0, 2, 0], sizes = [18, 16, 4], strides = [1, 1, 1]} : vector<18x18x4xf32> to vector<18x16x4xf32>
      %30 = tpu.concatenate %27, %28, %29 in 2 : vector<18x16x4xf32>, vector<18x16x4xf32>, vector<18x16x4xf32> -> vector<18x16x12xf32>
      %31 = vector.shape_cast %30 : vector<18x16x12xf32> to vector<288x12xf32>
      %c0_25 = arith.constant 0 : index
      %c0_26 = arith.constant 0 : index
      %32 = vector.load %arg7[%c0_25, %c0_26] : memref<288x12xf32, #tpu.memory_space<vmem>>, vector<288x12xf32>
      tpu.vector_store %arg7[%c0_25, %c0_26], %31 {strides = array<i32>} : memref<288x12xf32, #tpu.memory_space<vmem>>, vector<288x12xf32>,
    } else {
    }
    %c0 = arith.constant 0 : index
    %c0_1 = arith.constant 0 : index
    %3 = vector.load %arg7[%c0, %c0_1] : memref<288x12xf32, #tpu.memory_space<vmem>>, vector<256x12xf32>
    %c0_2 = arith.constant 0 : index
    %c0_3 = arith.constant 0 : index
    %c0_4 = arith.constant 0 : index
    %4 = vector.load %arg4[%c0_2, %c0_3, %c0_4] : memref<3x12x4xf32, #tpu.memory_space<vmem>>, vector<1x12x4xf32>
    %5 = vector.shape_cast %4 : vector<1x12x4xf32> to vector<12x4xf32>
    %cst = arith.constant dense<0.000000e+00> : vector<256x4xf32>
    %6 = tpu.matmul %3, %5, %cst {dimension_numbers = #tpu.dot_dimension_numbers<[1], [0], [0], [1], [0, 0, 1, 1], [], []>} : vector<256x12xf32>, vector<12x4xf32>, vector<256x4xf32> -> vector<256x4xf32>
    %c16 = arith.constant 16 : index
    %c0_5 = arith.constant 0 : index
    %7 = vector.load %arg7[%c16, %c0_5] : memref<288x12xf32, #tpu.memory_space<vmem>>, vector<256x12xf32>
    %c1 = arith.constant 1 : index
    %c0_6 = arith.constant 0 : index
    %c0_7 = arith.constant 0 : index
    %8 = vector.load %arg4[%c1, %c0_6, %c0_7] : memref<3x12x4xf32, #tpu.memory_space<vmem>>, vector<1x12x4xf32>
    %9 = vector.shape_cast %8 : vector<1x12x4xf32> to vector<12x4xf32>
    %cst_8 = arith.constant dense<0.000000e+00> : vector<256x4xf32>
    %10 = tpu.matmul %7, %9, %cst_8 {dimension_numbers = #tpu.dot_dimension_numbers<[1], [0], [0], [1], [0, 0, 1, 1], [], []>} : vector<256x12xf32>, vector<12x4xf32>, vector<256x4xf32> -> vector<256x4xf32>
    %11 = arith.addf %6, %10 : vector<256x4xf32>
    %c32 = arith.constant 32 : index
    %c0_9 = arith.constant 0 : index
    %12 = vector.load %arg7[%c32, %c0_9] : memref<288x12xf32, #tpu.memory_space<vmem>>, vector<256x12xf32>
    %c2 = arith.constant 2 : index
    %c0_10 = arith.constant 0 : index
    %c0_11 = arith.constant 0 : index
    %13 = vector.load %arg4[%c2, %c0_10, %c0_11] : memref<3x12x4xf32, #tpu.memory_space<vmem>>, vector<1x12x4xf32>
    %14 = vector.shape_cast %13 : vector<1x12x4xf32> to vector<12x4xf32>
    %cst_12 = arith.constant dense<0.000000e+00> : vector<256x4xf32>
    %15 = tpu.matmul %12, %14, %cst_12 {dimension_numbers = #tpu.dot_dimension_numbers<[1], [0], [0], [1], [0, 0, 1, 1], [], []>} : vector<256x12xf32>, vector<12x4xf32>, vector<256x4xf32> -> vector<256x4xf32>
    %16 = arith.addf %11, %15 : vector<256x4xf32>
    %c0_13 = arith.constant 0 : index
    %c0_14 = arith.constant 0 : index
    %17 = vector.load %arg5[%c0_13, %c0_14] : memref<1x4xf32, #tpu.memory_space<vmem>>, vector<1x4xf32>
    %18 = vector.broadcast %17 : vector<1x4xf32> to vector<256x4xf32>
    %19 = arith.addf %16, %18 : vector<256x4xf32>
    %cst_15 = arith.constant 0.000000e+00 : f32
    %20 = vector.broadcast %cst_15 : f32 to vector<256x4xf32>
    %21 = arith.maximumf %19, %20 : vector<256x4xf32>
    %c0_16 = arith.constant 0 : index
    %c0_17 = arith.constant 0 : index
    %c0_18 = arith.constant 0 : index
    %c0_19 = arith.constant 0 : index
    %22 = vector.load %arg6[%c0_16, %c0_17, %c0_18, %c0_19] : memref<1x1x256x4xf32, #tpu.memory_space<vmem>>, vector<1x1x256x4xf32>
    %23 = vector.shape_cast %22 : vector<1x1x256x4xf32> to vector<256x4xf32>
    %24 = vector.shape_cast %21 : vector<256x4xf32> to vector<1x1x256x4xf32>
    tpu.vector_store %arg6[%c0_16, %c0_17, %c0_18, %c0_19], %24 {strides = array<i32>} : memref<1x1x256x4xf32, #tpu.memory_space<vmem>>, vector<1x1x256x4xf32>,
    return
  }
  func.func @transform_0(%arg0: i32, %arg1: i32, %arg2: i32) -> (i32, i32, i32, i32, i32) {
    %c0_i32 = arith.constant 0 : i32
    %c0_i32_0 = arith.constant 0 : i32
    %c0_i32_1 = arith.constant 0 : i32
    %c0_i32_2 = arith.constant 0 : i32
    return %arg0, %arg1, %c0_i32, %c0_i32_0, %c0_i32_1 : i32, i32, i32, i32, i32
  }
  func.func @transform_1(%arg0: i32, %arg1: i32, %arg2: i32) -> (i32, i32, i32) {
    %c0_i32 = arith.constant 0 : i32
    %c0_i32_0 = arith.constant 0 : i32
    %c0_i32_1 = arith.constant 0 : i32
    return %c0_i32, %c0_i32_0, %arg2 : i32, i32, i32
  }
  func.func @transform_2(%arg0: i32, %arg1: i32, %arg2: i32) -> (i32, i32) {
    %c0_i32 = arith.constant 0 : i32
    %c0_i32_0 = arith.constant 0 : i32
    return %c0_i32, %arg2 : i32, i32
  }
  func.func @transform_3(%arg0: i32, %arg1: i32, %arg2: i32) -> (i32, i32, i32, i32) {
    %c0_i32 = arith.constant 0 : i32
    %c0_i32_0 = arith.constant 0 : i32
    return %arg0, %arg1, %c0_i32, %arg2 : i32, i32, i32, i32
  }
}

</mosaic_0001>

<bundles_post_ra>
// kernel: tpu_custom_call.1
= control target key start
LH: loop header
LB: loop body
LE: loop exit
PB: predicated region body
PF: predicated region fallthrough
CT: control target
= control target key end

     0   :  { %s2635_s12 = smov 0   ;;  %s2637_s13 = smov 0   ;;  %s3667_s0 = inlined_call_operand.vmem [shape: f32[2,1,18,18,4], index: 0, kind: input, shape index: {}]   ;;  %s3668_s1 = inlined_call_operand.vmem [shape: f32[3,12,4], index: 1, kind: input, shape index: {}]   ;;  %s3669_s2 = inlined_call_operand.vmem [shape: f32[1,4], index: 2, kind: input, shape index: {}]   ;;  %s3670_s3 = inlined_call_operand.vmem [shape: f32[2,1,256,4], index: 3, kind: output, shape index: {}]  }
   0x1   :  { %s2639_s14 = smov 0  }
   0x2 LB: > { %s32_s15 = sadd.s32 1, %s2606_s13  ;;  %p2107_p0 = scmp.ge.s32.totalorder %s2610_s14, 1  ;;  %s2610_s14 = sphi %s2639_s14, %s13_s14   ;;  %s2606_s13 = sphi %s2637_s13, %s3710_s13   ;;  %s2602_s12 = sphi %s2635_s12, %s3709_s12  }
   0x3   : > { %p34_p1 = scmp.ge.s32.totalorder %s32_s15, 2  ;;  %p183_p2 = scmp.lt.s32.totalorder %s2610_s14, 3 }
   0x5   : > { %s3712_s15 = smov (%p34_p1, %s32_s15), 0  ;;  %p184_p3 = pnand %p2107_p0, %p183_p2 }
   0x6   : > { %p225_p4 = scmp.lt.s32.totalorder (!%p184_p3), %s2602_s12, 1  ;;  %vm365_vm0 = vcmask (!%p184_p3), 1046528   ;;  %s2612_s20 = smov (!%p184_p3), 4   ;;  %vm564_vm1 = vcmask (!%p184_p3), 1045504   ;;  %vm1010_vm2 = vcmask (!%p184_p3), 1043456   ;;  %vm2614_vm3 = vmmov (!%p184_p3), 1  }
   0x7   : > { %187 = sbr.rel (%p184_p3) target bundleno = 531 (0x213), region = 32  ;;  %s2613_s21 = smov (!%p184_p3), 8   ;;  %vm2939_vm4 = vmpackc.low (!%p184_p3), %vm1010_vm2, %vm2614_vm3  ;;  %vm763_vm5 = vcmask (!%p184_p3), 31744   ;;  %vm800_vm6 = vcmask (!%p184_p3), 64512   ;;  %vm837_vm7 = vcmask (!%p184_p3), 97280  }
   0xe   : > { %s3714_s12 = smov (!%p225_p4, %s2602_s12), 1 }
   0xf   : > { %s2560_s16 = smul.u32 432, %s3714_s12  ;;  %s2217_s9 = sshll.u32 %s3714_s12, 8 }
  0x11   : > { %s2659_s19 = scalar_lea.vmem %s3667_s0, %s2560_s16  ;;  %s3550_s16 = scalar_lea.vmem %s3670_s3, %s2217_s9 }
  0x12   : > { %v2662_v0 = vld [vmem:[%s2659_s19 + $0x8] sm:$0xff]  ;;  %v259_v1 = vld [vmem:[%s2659_s19 + $0x10] sm:$0x3]  ;;  %v2666_v2 = vld [vmem:[%s2659_s19] sm:$0xff] }
  0x13   : > { %v367_v3 = vrot.slane %v2662_v0, 1  ;;  %v369_v4 = vrot.slane %v259_v1, 1  ;;  %v366_v5 = vrot.slane %v2666_v2, 1  ;;  %v2671_v6 = vld [vmem:[%s2659_s19 + $0x20] sm:$0xff]  ;;  %v262_v7 = vld [vmem:[%s2659_s19 + $0x28] sm:$0x3] }
  0x14   : > { %v372_v8 = vrot.slane %v2671_v6, 1  ;;  %v374_v9 = vrot.slane %v262_v7, 1  ;;  %v2676_v10 = vld [vmem:[%s2659_s19 + $0x18] sm:$0xff]  ;;  %v571_v14 = vrot.slane %v2671_v6, 2  ;;  %v565_v15 = vrot.slane %v2666_v2, 2  ;;  %v2698_v26 = vld [vmem:[%s2659_s19 + $0x30] sm:$0xff] }
  0x15   : > { %v370_v11 = vsel %vm365_vm0, %v367_v3, %v369_v4  ;;  %v368_v12 = vsel %vm365_vm0, %v366_v5, %v367_v3  ;;  %v371_v13 = vrot.slane %v2676_v10, 1  ;;  %v570_v18 = vrot.slane %v2676_v10, 2  ;;  %v2694_v24 = vld [vmem:[%s2659_s19 + $0x38] sm:$0xff]  ;;  %v265_v25 = vld [vmem:[%s2659_s19 + $0x40] sm:$0x3]  ;;  %v2710_v33 = vld [vmem:[%s2659_s19 + $0x50] sm:$0xff] }
  0x16   : > { %458 = vrot.lane.b32.xlu1 %v370_v11, %s2612_s20  ;;  %456 = vrot.lane.b32.xlu0 %v368_v12, %s2612_s20  ;;  %v375_v16 = vsel %vm365_vm0, %v372_v8, %v374_v9  ;;  %v566_v19 = vrot.slane %v2662_v0, 2  ;;  %v573_v22 = vrot.slane %v262_v7, 2  ;;  %v568_v23 = vrot.slane %v259_v1, 2  ;;  %v268_v38 = vld [vmem:[%s2659_s19 + $0x58] sm:$0x3]  ;;  %v2717_v39 = vld [vmem:[%s2659_s19 + $0xc8] sm:$0xff] }
  0x17   : > { %v373_v17 = vsel %vm365_vm0, %v371_v13, %v372_v8  ;;  %v572_v20 = vsel %vm564_vm1, %v570_v18, %v571_v14  ;;  %v377_v27 = vrot.slane %v2694_v24, 1  ;;  %v379_v28 = vrot.slane %v265_v25, 1  ;;  %v2720_v40 = vld [vmem:[%s2659_s19 + $0x48] sm:$0xff]  ;;  %v2723_v41 = vld [vmem:[%s2659_s19 + $0xd0] sm:$0x3]  ;;  %v2726_v42 = vld [vmem:[%s2659_s19 + $0xe0] sm:$0xff] }
  0x18   : > { %v567_v21 = vsel %vm564_vm1, %v565_v15, %v566_v19  ;;  %v574_v29 = vsel %vm564_vm1, %v571_v14, %v573_v22  ;;  %v569_v30 = vsel %vm564_vm1, %v566_v19, %v568_v23  ;;  %v376_v31 = vrot.slane %v2698_v26, 1  ;;  %v286_v46 = vld [vmem:[%s2659_s19 + $0xe8] sm:$0x3]  ;;  %v2739_v52 = vld [vmem:[%s2659_s19 + $0xf8] sm:$0xff]  ;;  %v289_v58 = vld [vmem:[%s2659_s19 + $0x100] sm:$0x3] }
  0x19   : > { %v380_v32 = vsel %vm365_vm0, %v377_v27, %v379_v28  ;;  %v576_v35 = vrot.slane %v2694_v24, 2  ;;  %v578_v36 = vrot.slane %v265_v25, 2  ;;  %v575_v37 = vrot.slane %v2698_v26, 2  ;;  %v2743_v55 = vld [vmem:[%s2659_s19 + $0x68] sm:$0xff]  ;;  %v2755_v60 = vld [vmem:[%s2659_s19 + $0x70] sm:$0x3] }
  0x1a   : > { %462 = vrot.lane.b32.xlu1 %v375_v16, %s2612_s20  ;;  %460 = vrot.lane.b32.xlu0 %v373_v17, %s2612_s20  ;;  %v378_v34 = vsel %vm365_vm0, %v376_v31, %v377_v27  ;;  %v382_v43 = vrot.slane %v2710_v33, 1  ;;  %v384_v44 = vrot.slane %v268_v38, 1  ;;  %v407_v45 = vrot.slane %v2717_v39, 1  ;;  %v2759_v63 = vld [vmem:[%s2659_s19 + $0x110] sm:$0xff]  ;;  %v2764_v4 = vld [vmem:[%s2659_s19 + $0x60] sm:$0xff] }
  0x1b   : > { %v579_v47 = vsel %vm564_vm1, %v576_v35, %v578_v36  ;;  %v577_v48 = vsel %vm564_vm1, %v575_v37, %v576_v35  ;;  %v381_v49 = vrot.slane %v2720_v40, 1  ;;  %v409_v50 = vrot.slane %v2723_v41, 1  ;;  %v292_v8 = vld [vmem:[%s2659_s19 + $0x118] sm:$0x3]  ;;  %v2783_v17 = vld [vmem:[%s2659_s19 + $0x128] sm:$0xff]  ;;  %v2814_v35 = vld [vmem:[%s2659_s19 + $0x80] sm:$0xff] }
  0x1c   : > { %v3688_v51 = vrot.slane %v2726_v42, 1  ;;  %v581_v53 = vrot.slane %v2710_v33, 2  ;;  %v583_v54 = vrot.slane %v268_v38, 2  ;;  %v414_v57 = vrot.slane %v286_v46, 1  ;;  %v295_v22 = vld [vmem:[%s2659_s19 + $0x130] sm:$0x3] }
  0x1d   : > { %v2748_v56 = vsel %vm365_vm0, %v407_v45, %v409_v50  ;;  %v385_v59 = vsel %vm365_vm0, %v382_v43, %v384_v44  ;;  %v3683_v61 = vrot.slane %v2726_v42, 2  ;;  %v613_v62 = vrot.slane %v286_v46, 2  ;;  %v2817_v36 = vld [vmem:[%s2659_s19 + $0x88] sm:$0x3]  ;;  %v2834_v50 = vld [vmem:[%s2659_s19 + $0x158] sm:$0xff] }
  0x1e   : > { %659 = vrot.lane.b32.xlu1 %v572_v20, %s2613_s21  ;;  %655 = vrot.lane.b32.xlu0 %v567_v21, %s2613_s21  ;;  %v383_v1 = vsel %vm365_vm0, %v381_v49, %v382_v43  ;;  %v580_v3 = vrot.slane %v2720_v40, 2  ;;  %v2769_v5 = vsel %vm365_vm0, %v3688_v51, %v414_v57  ;;  %v3680_v7 = vrot.slane %v2739_v52, 1  ;;  %v3004_v51 = vld [vmem:[%s2659_s19 + $0xc0] sm:$0xff] }
  0x1f   : > { %v2776_v9 = vsel %vm564_vm1, %v3683_v61, %v613_v62  ;;  %v419_v11 = vrot.slane %v289_v58, 1  ;;  %v3679_v12 = vrot.slane %v2739_v52, 2  ;;  %v584_v13 = vsel %vm564_vm1, %v581_v53, %v583_v54 }
  0x20   : > { %v387_v14 = vrot.slane %v2743_v55, 1  ;;  %v618_v15 = vrot.slane %v289_v58, 2  ;;  %v3678_v16 = vrot.slane %v2759_v63, 1  ;;  %v389_v18 = vrot.slane %v2755_v60, 1 }
  0x21   : > { %v386_v19 = vrot.slane %v2764_v4, 1  ;;  %v2792_v20 = vsel %vm365_vm0, %v3680_v7, %v419_v11  ;;  %v424_v21 = vrot.slane %v292_v8, 1  ;;  %v582_v23 = vsel %vm564_vm1, %v580_v3, %v581_v53 }
  0x22   : > { %661 = vrot.lane.b32.xlu1 %v574_v29, %s2613_s21  ;;  %657 = vrot.lane.b32.xlu0 %v569_v30, %s2613_s21  ;;  %v2799_v25 = vsel %vm564_vm1, %v3679_v12, %v618_v15  ;;  %v3677_v27 = vrot.slane %v2759_v63, 2  ;;  %v623_v28 = vrot.slane %v292_v8, 2  ;;  %v2803_v29 = vld [vmem:[%s2659_s19 + $0x140] sm:$0xff]  ;;  %v3676_v31 = vrot.slane %v2783_v17, 1  ;;  %v2852_v8 = vld [vmem:[%s2659_s19 + $0x170] sm:$0xff] }
  0x23   : > { %v2808_v30 = vsel %vm365_vm0, %v3678_v16, %v424_v21  ;;  %v429_v38 = vrot.slane %v295_v22, 1  ;;  %v3675_v43 = vrot.slane %v2783_v17, 2  ;;  %v588_v44 = vrot.slane %v2755_v60, 2 }
  0x24   : > { %v2822_v37 = vsel %vm564_vm1, %v3677_v27, %v623_v28  ;;  %v585_v46 = vrot.slane %v2764_v4, 2  ;;  %v3673_v49 = vrot.slane %v2803_v29, 1  ;;  %v390_v53 = vsel %vm365_vm0, %v387_v14, %v389_v18  ;;  %v304_v18 = vld [vmem:[%s2659_s19 + $0x178] sm:$0x3] }
  0x25   : > { %v388_v54 = vsel %vm365_vm0, %v386_v19, %v387_v14  ;;  %v2841_v57 = vsel %vm365_vm0, %v3676_v31, %v429_v38  ;;  %v392_v60 = vrot.slane %v2814_v35, 1  ;;  %v394_v11 = vrot.slane %v2817_v36, 1  ;;  %v2875_v38 = vld [vmem:[%s2659_s19 + $0x98] sm:$0xff] }
  0x26   : > { %466 = vrot.lane.b32.xlu1 %v380_v32, %s2612_s20  ;;  %464 = vrot.lane.b32.xlu0 %v378_v34, %s2612_s20  ;;  %v298_v32 = vld [vmem:[%s2659_s19 + $0x148] sm:$0x3]  ;;  %v586_v34 = vrot.slane %v2743_v55, 2  ;;  %v3672_v15 = vrot.slane %v2834_v50, 1 }
  0x27   : > { %v434_v58 = vrot.slane %v298_v32, 1  ;;  %v633_v3 = vrot.slane %v298_v32, 2  ;;  %v591_v32 = vrot.slane %v2814_v35, 2 }
  0x28   : > { %v589_v19 = vsel %vm564_vm1, %v586_v34, %v588_v44  ;;  %v587_v28 = vsel %vm564_vm1, %v585_v46, %v586_v34  ;;  %v593_v44 = vrot.slane %v2817_v36, 2  ;;  %v307_v34 = vld [vmem:[%s2659_s19 + $0x190] sm:$0x3]  ;;  %v2112_v46 = vld [vmem:[%s3668_s1 + $0x18] sm:$0xf]  ;;  %v643_v36 = vrot.slane %v304_v18, 2 }
  0x29   : > { %v2859_v14 = vsel %vm365_vm0, %v3673_v49, %v434_v58  ;;  %v907_v49 = vld [vmem:[%s3668_s1 + $0x8] sm:$0xf]  ;;  %v648_v61 = vrot.slane %v307_v34, 2 }
  0x2a   : > { %665 = vrot.lane.b32.xlu1 %v579_v47, %s2613_s21  ;;  %663 = vrot.lane.b32.xlu0 %v577_v48, %s2613_s21  ;;  %v2830_v47 = vld [vmem:[%s2659_s19 + $0x78] sm:$0xff]  ;;  %v628_v48 = vrot.slane %v295_v22, 2 }
  0x2b   : > { %v590_v16 = vrot.slane %v2830_v47, 2 }
  0x2c   : > { %v2848_v62 = vsel %vm564_vm1, %v3675_v43, %v628_v48  ;;  %v2912_v43 = vld [vmem:[%s2659_s19 + $0x90] sm:$0xff] }
  0x2e   : > { %470 = vrot.lane.b32.xlu1 %v385_v59, %s2612_s20  ;;  %468 = vrot.lane.b32.xlu0 %v383_v1, %s2612_s20  ;;  %v301_v59 = vld [vmem:[%s2659_s19 + $0x160] sm:$0x3]  ;;  %v3671_v1 = vrot.slane %v2803_v29, 2 }
  0x2f   : > { %v439_v22 = vrot.slane %v301_v59, 1  ;;  %v638_v48 = vrot.slane %v301_v59, 2 }
  0x30   : > { %v2869_v21 = vsel %vm564_vm1, %v3671_v1, %v633_v3  ;;  %v444_v3 = vrot.slane %v304_v18, 1  ;;  %v3682_v1 = vrot.slane %v2852_v8, 2  ;;  %v395_v18 = vsel %vm365_vm0, %v392_v60, %v394_v11 }
  0x31   : > { %v2885_v58 = vsel %vm365_vm0, %v3672_v15, %v439_v22  ;;  %v2111_v22 = vld [vmem:[%s3668_s1 + $0x10] sm:$0xff]  ;;  %v906_v15 = vld [vmem:[%s3668_s1] sm:$0xff]  ;;  %v449_v11 = vrot.slane %v307_v34, 1 }
  0x32   : > { %669 = vrot.lane.b32.xlu1 %v584_v13, %s2613_s21  ;;  %667 = vrot.lane.b32.xlu0 %v582_v23, %s2613_s21  ;;  %v391_v13 = vrot.slane %v2830_v47, 1  ;;  %v3674_v23 = vrot.slane %v2834_v50, 2  ;;  %v2476_v12 = vpack.c.bf16 %v2112_v46, %v2111_v22  ;;  %v2931_v7 = vpack.c.bf16 %v907_v49, %v906_v15 }
  0x33   : > { %v396_v15 = vrot.slane %v2912_v43, 1  ;;  %v592_v22 = vsel %vm564_vm1, %v590_v16, %v591_v32 }
  0x34   : > { %v2894_v59 = vsel %vm564_vm1, %v3674_v23, %v638_v48  ;;  %v393_v48 = vsel %vm365_vm0, %v391_v13, %v392_v60  ;;  %v277_v23 = vld [vmem:[%s2659_s19 + $0xa0] sm:$0x3]  ;;  %v310_v13 = vld [vmem:[%s2659_s19 + $0x1a8] sm:$0x3]  ;;  %2478 = vmatprep.subr.msk.bf16.mxu1 %vm2939_vm4, %v2476_v12  ;;  %2484 = vmatprep.subr.msk.bf16.mxu0 %vm2939_vm4, %v2931_v7 }
  0x35   : > { %v2927_v60 = vld [vmem:[%s2659_s19 + $0x1a0] sm:$0xff]  ;;  %v399_v49 = vrot.slane %v277_v23, 1  ;;  %v454_v46 = vrot.slane %v310_v13, 1  ;;  %2481 = vmatpush3.bf16.msk.msra.mxu1 %vm2939_vm4, %v2476_v12  ;;  %2487 = vmatpush3.bf16.msk.msra.mxu0 %vm2939_vm4, %v2931_v7  ;;  %v596_v12 = vrot.slane %v2875_v38, 2 }
  0x36   : > { %474 = vrot.lane.b32.xlu1 %v390_v53, %s2612_s20  ;;  %472 = vrot.lane.b32.xlu0 %v388_v54, %s2612_s20  ;;  %v3681_v53 = vrot.slane %v2852_v8, 1  ;;  %v2879_v54 = vld [vmem:[%s2659_s19 + $0x188] sm:$0xff] }
  0x37   : > { %v3687_v27 = vrot.slane %v2879_v54, 1  ;;  %2494 = vmatprep.subr.msk.bf16.mxu1 %vm2939_vm4, %v2931_v7 }
  0x38   : > { %v2917_v31 = vsel %vm365_vm0, %v3681_v53, %v444_v3  ;;  %v594_v3 = vsel %vm564_vm1, %v591_v32, %v593_v44  ;;  %v3684_v44 = vrot.slane %v2927_v60, 1 }
  0x39   : > { %v2937_v53 = vsel %vm365_vm0, %v3687_v27, %v449_v11 }
  0x3a   : > { %673 = vrot.lane.b32.xlu1 %v589_v19, %s2613_s21  ;;  %671 = vrot.lane.b32.xlu0 %v587_v28, %s2613_s21  ;;  %v2924_v19 = vsel %vm564_vm1, %v3682_v1, %v643_v36  ;;  %v397_v28 = vrot.slane %v2875_v38, 1  ;;  %v3686_v1 = vrot.slane %v2879_v54, 2  ;;  %v2968_v16 = vsel %vm365_vm0, %v3684_v44, %v454_v46  ;;  %v2985_v44 = vld [vmem:[%s2659_s19 + $0xb0] sm:$0xff] }
  0x3b   : > { %v595_v46 = vrot.slane %v2912_v43, 2 }
  0x3c   : > { %v2957_v34 = vsel %vm564_vm1, %v3686_v1, %v648_v61  ;;  %v400_v32 = vsel %vm365_vm0, %v397_v28, %v399_v49  ;;  %v398_v11 = vsel %vm365_vm0, %v396_v15, %v397_v28  ;;  %v601_v15 = vrot.slane %v2985_v44, 2 }
  0x3d   : > { %v597_v49 = vsel %vm564_vm1, %v595_v46, %v596_v12 }
  0x3e   : > { %478 = vrot.lane.b32.xlu1 %v395_v18, %s2612_s20  ;;  %476 = vrot.lane.b32.xlu0 %v393_v48, %s2612_s20  ;;  %v3685_v18 = vrot.slane %v2927_v60, 2  ;;  %v653_v48 = vrot.slane %v310_v13, 2  ;;  %v598_v13 = vrot.slane %v277_v23, 2 }
  0x40   : > { %v2973_v61 = vsel %vm564_vm1, %v3685_v18, %v653_v48  ;;  %v280_v48 = vld [vmem:[%s2659_s19 + $0xb8] sm:$0x3]  ;;  %v2989_v18 = vld [vmem:[%s2659_s19 + $0xa8] sm:$0xff] }
  0x41   : > { %v404_v28 = vrot.slane %v280_v48, 1  ;;  %v401_v23 = vrot.slane %v2989_v18, 1  ;;  %v600_v27 = vrot.slane %v2989_v18, 2 }
  0x42   : > { %677 = vrot.lane.b32.xlu1 %v594_v3, %s2613_s21  ;;  %675 = vrot.lane.b32.xlu0 %v592_v22, %s2613_s21  ;;  %v402_v3 = vrot.slane %v2985_v44, 1  ;;  %v599_v22 = vsel %vm564_vm1, %v596_v12, %v598_v13  ;;  %v2179_v12 = vld [vmem:[%s3668_s1 + $0x20] sm:$0xff]  ;;  %v2180_v13 = vld [vmem:[%s3668_s1 + $0x28] sm:$0xf] }
  0x43   : > { %v3014_v46 = vpack.c.bf16 %v2180_v13, %v2179_v12  ;;  %v3692_v13 = vrot.slane %v2726_v42, 2 }
  0x44   : > { %v405_v1 = vsel %vm365_vm0, %v402_v3, %v404_v28  ;;  %v608_v28 = vrot.slane %v2723_v41, 2  ;;  %v3691_v41 = vrot.slane %v2726_v42, 1 }
  0x45   : > { %2490 = vmatprep.subr.msk.bf16.mxu0 %vm2939_vm4, %v3014_v46 }
  0x46   : > { %482 = vrot.lane.b32.xlu1 %v400_v32, %s2612_s20  ;;  %480 = vrot.lane.b32.xlu0 %v398_v11, %s2612_s20  ;;  %v403_v32 = vsel %vm365_vm0, %v401_v23, %v402_v3  ;;  %v603_v11 = vrot.slane %v280_v48, 2  ;;  %v602_v3 = vsel %vm564_vm1, %v600_v27, %v601_v15  ;;  %v605_v27 = vrot.slane %v3004_v51, 2  ;;  %v3031_v23 = vld [vmem:[%s2659_s19 + $0xd8] sm:$0xff] }
  0x47   : > { %v610_v12 = vrot.slane %v3031_v23, 2 }
  0x48   : > { %v604_v48 = vsel %vm564_vm1, %v601_v15, %v603_v11 }
  0x4a   : > { %681 = vrot.lane.b32.xlu1 %v599_v22, %s2613_s21  ;;  %679 = vrot.lane.b32.xlu0 %v597_v49, %s2613_s21  ;;  %v406_v22 = vrot.slane %v3004_v51, 1  ;;  %v606_v49 = vrot.slane %v2717_v39, 2 }
  0x4c   : > { %v609_v15 = vsel %vm564_vm1, %v606_v49, %v608_v28  ;;  %v3694_v28 = vrot.slane %v2739_v52, 2 }
  0x4e   : > { %486 = vrot.lane.b32.xlu1 %v405_v1, %s2612_s20  ;;  %484 = vrot.lane.b32.xlu0 %v403_v32, %s2612_s20  ;;  %v408_v1 = vsel %vm365_vm0, %v406_v22, %v407_v45  ;;  %v607_v32 = vsel %vm564_vm1, %v605_v27, %v606_v49  ;;  %v411_v45 = vrot.slane %v3031_v23, 1  ;;  %v3693_v22 = vrot.slane %v2739_v52, 1  ;;  %v3063_v49 = vld [vmem:[%s2659_s19 + $0x108] sm:$0xff] }
  0x4f   : > { %v421_v27 = vrot.slane %v3063_v49, 1 }
  0x50   : > { %v413_v11 = vsel %vm365_vm0, %v411_v45, %v3691_v41  ;;  %v3080_v45 = vld [vmem:[%s2659_s19 + $0x120] sm:$0xff]  ;;  %v3696_v41 = vrot.slane %v2759_v63, 2 }
  0x52   : > { %685 = vrot.lane.b32.xlu1 %v604_v48, %s2613_s21  ;;  %683 = vrot.lane.b32.xlu0 %v602_v3, %s2613_s21  ;;  %v612_v48 = vsel %vm564_vm1, %v610_v12, %v3692_v13  ;;  %v3697_v12 = vrot.slane %v2783_v17, 1 }
  0x56   : > { %490 = vrot.lane.b32.xlu1 %v2748_v56, %s2612_s20  ;;  %488 = vrot.lane.b32.xlu0 %v408_v1, %s2612_s20  ;;  %v3046_v56 = vld [vmem:[%s2659_s19 + $0xf0] sm:$0xff] }
  0x57   : > { %v416_v3 = vrot.slane %v3046_v56, 1 }
  0x59   : > { %v418_v1 = vsel %vm365_vm0, %v416_v3, %v3693_v22  ;;  %v3698_v3 = vrot.slane %v2783_v17, 2 }
  0x5a   : > { %689 = vrot.lane.b32.xlu1 %v609_v15, %s2613_s21  ;;  %687 = vrot.lane.b32.xlu0 %v607_v32, %s2613_s21  ;;  %v3695_v15 = vrot.slane %v2759_v63, 1 }
  0x5c   : > { %v423_v32 = vsel %vm365_vm0, %v421_v27, %v3695_v15  ;;  %v3701_v15 = vrot.slane %v2834_v50, 1 }
  0x5e   : > { %494 = vrot.lane.b32.xlu1 %v2769_v5, %s2612_s20  ;;  %492 = vrot.lane.b32.xlu0 %v413_v11, %s2612_s20  ;;  %v615_v5 = vrot.slane %v3046_v56, 2  ;;  %v426_v11 = vrot.slane %v3080_v45, 1 }
  0x60   : > { %v428_v13 = vsel %vm365_vm0, %v426_v11, %v3697_v12 }
  0x62   : > { %693 = vrot.lane.b32.xlu1 %v2776_v9, %s2613_s21  ;;  %691 = vrot.lane.b32.xlu0 %v612_v48, %s2613_s21  ;;  %v617_v9 = vsel %vm564_vm1, %v615_v5, %v3694_v28  ;;  %v3097_v48 = vld [vmem:[%s2659_s19 + $0x138] sm:$0xff]  ;;  %v3114_v28 = vld [vmem:[%s2659_s19 + $0x150] sm:$0xff] }
  0x63   : > { %v431_v22 = vrot.slane %v3097_v48, 1 }
  0x66   : > { %498 = vrot.lane.b32.xlu1 %v2792_v20, %s2612_s20  ;;  %496 = vrot.lane.b32.xlu0 %v418_v1, %s2612_s20  ;;  %v620_v20 = vrot.slane %v3063_v49, 2  ;;  %v3699_v1 = vrot.slane %v2803_v29, 1 }
  0x68   : > { %v433_v5 = vsel %vm365_vm0, %v431_v22, %v3699_v1  ;;  %v3148_v22 = vld [vmem:[%s2659_s19 + $0x180] sm:$0xff] }
  0x6a   : > { %697 = vrot.lane.b32.xlu1 %v2799_v25, %s2613_s21  ;;  %695 = vrot.lane.b32.xlu0 %v617_v9, %s2613_s21  ;;  %v622_v25 = vsel %vm564_vm1, %v620_v20, %v3696_v41  ;;  %v3700_v9 = vrot.slane %v2803_v29, 2  ;;  %v3131_v20 = vld [vmem:[%s2659_s19 + $0x168] sm:$0xff]  ;;  %v3702_v41 = vrot.slane %v2834_v50, 2 }
  0x6e   : > { %502 = vrot.lane.b32.xlu1 %v2808_v30, %s2612_s20  ;;  %500 = vrot.lane.b32.xlu0 %v423_v32, %s2612_s20  ;;  %v625_v30 = vrot.slane %v3080_v45, 2 }
  0x72   : > { %701 = vrot.lane.b32.xlu1 %v2822_v37, %s2613_s21  ;;  %699 = vrot.lane.b32.xlu0 %v622_v25, %s2613_s21  ;;  %v627_v37 = vsel %vm564_vm1, %v625_v30, %v3698_v3  ;;  %v441_v25 = vrot.slane %v3131_v20, 1 }
  0x76   : > { %506 = vrot.lane.b32.xlu1 %v2841_v57, %s2612_s20  ;;  %504 = vrot.lane.b32.xlu0 %v428_v13, %s2612_s20  ;;  %v630_v57 = vrot.slane %v3097_v48, 2  ;;  %v3703_v13 = vrot.slane %v2852_v8, 1 }
  0x78   : > { %v632_v27 = vsel %vm564_vm1, %v630_v57, %v3700_v9  ;;  %v443_v30 = vsel %vm365_vm0, %v441_v25, %v3703_v13  ;;  %v3179_v13 = vld [vmem:[%s2659_s19 + $0x198] sm:$0xff] }
  0x7a   : > { %705 = vrot.lane.b32.xlu1 %v2848_v62, %s2613_s21  ;;  %703 = vrot.lane.b32.xlu0 %v627_v37, %s2613_s21  ;;  %v436_v62 = vrot.slane %v3114_v28, 1 }
  0x7c   : > { %v438_v32 = vsel %vm365_vm0, %v436_v62, %v3701_v15 }
  0x7e   : > { %510 = vrot.lane.b32.xlu1 %v2859_v14, %s2612_s20  ;;  %508 = vrot.lane.b32.xlu0 %v433_v5, %s2612_s20  ;;  %v635_v14 = vrot.slane %v3114_v28, 2  ;;  %v446_v5 = vrot.slane %v3148_v22, 1 }
  0x82   : > { %709 = vrot.lane.b32.xlu1 %v2869_v21, %s2613_s21  ;;  %707 = vrot.lane.b32.xlu0 %v632_v27, %s2613_s21  ;;  %v637_v21 = vsel %vm564_vm1, %v635_v14, %v3702_v41 }
  0x86   : > { %514 = vrot.lane.b32.xlu1 %v2885_v58, %s2612_s20  ;;  %512 = vrot.lane.b32.xlu0 %v438_v32, %s2612_s20  ;;  %v640_v58 = vrot.slane %v3131_v20, 2  ;;  %v645_v32 = vrot.slane %v3148_v22, 2 }
  0x88   : > { %v459_v11 = vpop.permute.xlu1 %458  ;;  %v457_v12 = vpop.permute.xlu0 %456 }
  0x89   : > { %v764_v57 = vsel %vm763_vm5, %v2666_v2, %v457_v12  ;;  %v3705_v2 = vrot.slane %v2879_v54, 1  ;;  %v765_v14 = vsel %vm763_vm5, %v2662_v0, %v459_v11  ;;  %v3706_v0 = vrot.slane %v2879_v54, 2 }
  0x8a   : > { %713 = vrot.lane.b32.xlu1 %v2894_v59, %s2613_s21  ;;  %711 = vrot.lane.b32.xlu0 %v637_v21, %s2613_s21  ;;  %v3704_v59 = vrot.slane %v2852_v8, 2 }
  0x8c   : > { %v463_v3 = vpop.permute.xlu1 %462  ;;  %v461_v37 = vpop.permute.xlu0 %460  ;;  %v642_v1 = vsel %vm564_vm1, %v640_v58, %v3704_v59  ;;  %v451_v58 = vrot.slane %v3179_v13, 1 }
  0x8d   : > { %v766_v9 = vsel %vm763_vm5, %v2676_v10, %v461_v37  ;;  %v448_v10 = vsel %vm365_vm0, %v446_v5, %v3705_v2  ;;  %v767_v41 = vsel %vm763_vm5, %v2671_v6, %v463_v3  ;;  %v647_v6 = vsel %vm564_vm1, %v645_v32, %v3706_v0 }
  0x8e   : > { %518 = vrot.lane.b32.xlu1 %v2917_v31, %s2612_s20  ;;  %516 = vrot.lane.b32.xlu0 %v443_v30, %s2612_s20  ;;  %v3708_v2 = vrot.slane %v2927_v60, 2 }
  0x90   : > { %v660_v27 = vpop.permute.xlu1 %659  ;;  %v656_v62 = vpop.permute.xlu0 %655 }
  0x91   : > { %v803_v31 = vsel %vm800_vm6, %v766_v9, %v660_v27  ;;  %v801_v15 = vsel %vm800_vm6, %v764_v57, %v656_v62  ;;  %v3707_v57 = vrot.slane %v2927_v60, 1 }
  0x92   : > { %840 = vst.msk [vmem:[#allocation2 + $0x10] sm:$0xff] %vm837_vm7, %v803_v31  ;;  %838 = vst.msk [vmem:[#allocation2] sm:$0xff] %vm837_vm7, %v801_v15  ;;  %717 = vrot.lane.b32.xlu1 %v2924_v19, %s2613_s21  ;;  %715 = vrot.lane.b32.xlu0 %v642_v1, %s2613_s21 }
  0x93   : > { %v453_v9 = vsel %vm365_vm0, %v451_v58, %v3707_v57 }
  0x94   : > { %v662_v21 = vpop.permute.xlu1 %661  ;;  %v658_v25 = vpop.permute.xlu0 %657 }
  0x95   : > { %v804_v12 = vsel %vm800_vm6, %v767_v41, %v662_v21  ;;  %v802_v19 = vsel %vm800_vm6, %v765_v14, %v658_v25 }
  0x96   : > { %841 = vst.msk [vmem:[#allocation2 + $0x18] sm:$0xff] %vm837_vm7, %v804_v12  ;;  %839 = vst.msk [vmem:[#allocation2 + $0x8] sm:$0xff] %vm837_vm7, %v802_v19  ;;  %522 = vrot.lane.b32.xlu1 %v2937_v53, %s2612_s20  ;;  %520 = vrot.lane.b32.xlu0 %v448_v10, %s2612_s20 }
  0x98   : > { %v467_v11 = vpop.permute.xlu1 %466  ;;  %v465_v30 = vpop.permute.xlu0 %464 }
  0x99   : > { %v876_v3 = vld [vmem:[#allocation2 + $0x10] sm:$0xff]  ;;  %v874_v37 = vld [vmem:[#allocation2] sm:$0xff]  ;;  %v769_v53 = vsel %vm763_vm5, %v2694_v24, %v467_v11  ;;  %v768_v59 = vsel %vm763_vm5, %v2698_v26, %v465_v30 }
  0x9a   : > { %721 = vrot.lane.b32.xlu1 %v2957_v34, %s2613_s21  ;;  %719 = vrot.lane.b32.xlu0 %v647_v6, %s2613_s21  ;;  %v650_v34 = vrot.slane %v3179_v13, 2 }
  0x9b   : > { %2324 = vmatprep.mubr.msk.f32.mxu1 %vm837_vm7, %v876_v3  ;;  %2376 = vmatprep.mubr.msk.f32.mxu0 %vm837_vm7, %v874_v37 }
  0x9c   : > { %v666_v1 = vpop.permute.xlu1 %665  ;;  %v664_v5 = vpop.permute.xlu0 %663  ;;  %v652_v10 = vsel %vm564_vm1, %v650_v34, %v3708_v2 }
  0x9d   : > { %v806_v27 = vsel %vm800_vm6, %v769_v53, %v666_v1  ;;  %v805_v62 = vsel %vm800_vm6, %v768_v59, %v664_v5  ;;  %v877_v31 = vld [vmem:[#allocation2 + $0x18] sm:$0xff]  ;;  %v875_v15 = vld [vmem:[#allocation2 + $0x8] sm:$0xff] }
  0x9e   : > { %843 = vst.msk [vmem:[#allocation2 + $0x28] sm:$0xff] %vm837_vm7, %v806_v27  ;;  %842 = vst.msk [vmem:[#allocation2 + $0x20] sm:$0xff] %vm837_vm7, %v805_v62  ;;  %2325 = vmatmul.mubr.msk.f32.vlgmr.msra.gmra.mrb[0].mxu1 %vm837_vm7, %v877_v31  ;;  %2377 = vmatmul.mubr.msk.f32.vlgmr.msra.gmra.mrb[0].mxu0 %vm837_vm7, %v875_v15 }
  0x9f   : > { %2379 = vmatprep.mubr.msk.f32.mxu0 %vm837_vm7, %v876_v3  ;;  %524 = vrot.lane.b32.xlu0 %v453_v9, %s2612_s20 }
  0xa0   : > { %v471_v24 = vpop.permute.xlu1 %470  ;;  %v469_v26 = vpop.permute.xlu0 %468  ;;  %526 = vrot.lane.b32.xlu1 %v2968_v16, %s2612_s20  ;;  %2493 = vmatpush3.bf16.msk.msra.mxu0 %vm2939_vm4, %v3014_v46 }
  0xa1   : > { %2495 = vmatpush3.bf16.msk.msra.mxu1 %vm2939_vm4, %v2931_v7  ;;  %v771_v32 = vsel %vm763_vm5, %v2710_v33, %v471_v24  ;;  %v770_v16 = vsel %vm763_vm5, %v2720_v40, %v469_v26 }
  0xa2   : > { %2380 = vmatmul.mubr.msk.f32.gmra.mrb[2].mxu0 %vm837_vm7, %v877_v31 }
  0xa3   : > { %723 = vrot.lane.b32.xlu0 %v652_v10, %s2613_s21 }
  0xa4   : > { %v670_v14 = vpop.permute.xlu1 %669  ;;  %v668_v41 = vpop.permute.xlu0 %667  ;;  %725 = vrot.lane.b32.xlu1 %v2973_v61, %s2613_s21 }
  0xa5   : > { %v808_v46 = vsel %vm800_vm6, %v771_v32, %v670_v14  ;;  %v807_v36 = vsel %vm800_vm6, %v770_v16, %v668_v41  ;;  %v3232_v7 = vld [vmem:[#allocation2 + $0x20] sm:$0xff]  ;;  %v3234_v21 = vld [vmem:[#allocation2 + $0x28] sm:$0xff] }
  0xa6   : > { %845 = vst.msk [vmem:[#allocation2 + $0x38] sm:$0xff] %vm837_vm7, %v808_v46  ;;  %844 = vst.msk [vmem:[#allocation2 + $0x30] sm:$0xff] %vm837_vm7, %v807_v36  ;;  %2327 = vmatprep.mubr.msk.f32.mxu1 %vm837_vm7, %v3232_v7  ;;  %2382 = vmatprep.mubr.msk.f32.mxu0 %vm837_vm7, %v3232_v7 }
  0xa7   : > { %2328 = vmatmul.mubr.msk.f32.gmra.mrb[2].mxu1 %vm837_vm7, %v3234_v21  ;;  %2383 = vmatmul.mubr.msk.f32.gmra.mrb[4].mxu0 %vm837_vm7, %v3234_v21 }
  0xa8   : > { %v475_v33 = vpop.permute.xlu1 %474  ;;  %v473_v40 = vpop.permute.xlu0 %472 }
  0xa9   : > { %v773_v61 = vsel %vm763_vm5, %v2743_v55, %v475_v33  ;;  %v772_v25 = vsel %vm763_vm5, %v2764_v4, %v473_v40 }
  0xac   : > { %v674_v12 = vpop.permute.xlu1 %673  ;;  %v672_v19 = vpop.permute.xlu0 %671 }
  0xad   : > { %v810_v0 = vsel %vm800_vm6, %v773_v61, %v674_v12  ;;  %v809_v6 = vsel %vm800_vm6, %v772_v25, %v672_v19  ;;  %v3252_v11 = vld [vmem:[#allocation2 + $0x30] sm:$0xff]  ;;  %v3254_v30 = vld [vmem:[#allocation2 + $0x38] sm:$0xff] }
  0xae   : > { %847 = vst.msk [vmem:[#allocation2 + $0x48] sm:$0xff] %vm837_vm7, %v810_v0  ;;  %846 = vst.msk [vmem:[#allocation2 + $0x40] sm:$0xff] %vm837_vm7, %v809_v6  ;;  %2330 = vmatprep.mubr.msk.f32.mxu1 %vm837_vm7, %v3252_v11  ;;  %2385 = vmatprep.mubr.msk.f32.mxu0 %vm837_vm7, %v3252_v11 }
  0xaf   : > { %2331 = vmatmul.mubr.msk.f32.gmra.mrb[4].mxu1 %vm837_vm7, %v3254_v30  ;;  %2386 = vmatmul.mubr.msk.f32.gmra.mrb[6].mxu0 %vm837_vm7, %v3254_v30 }
  0xb0   : > { %v479_v55 = vpop.permute.xlu1 %478  ;;  %v477_v4 = vpop.permute.xlu0 %476 }
  0xb1   : > { %v775_v58 = vsel %vm763_vm5, %v2814_v35, %v479_v55  ;;  %v774_v3 = vsel %vm763_vm5, %v2830_v47, %v477_v4 }
  0xb4   : > { %v678_v37 = vpop.permute.xlu1 %677  ;;  %v676_v53 = vpop.permute.xlu0 %675 }
  0xb5   : > { %v812_v59 = vsel %vm800_vm6, %v775_v58, %v678_v37  ;;  %v811_v1 = vsel %vm800_vm6, %v774_v3, %v676_v53  ;;  %v3272_v5 = vld [vmem:[#allocation2 + $0x40] sm:$0xff]  ;;  %v3274_v57 = vld [vmem:[#allocation2 + $0x48] sm:$0xff] }
  0xb6   : > { %849 = vst.msk [vmem:[#allocation2 + $0x58] sm:$0xff] %vm837_vm7, %v812_v59  ;;  %848 = vst.msk [vmem:[#allocation2 + $0x50] sm:$0xff] %vm837_vm7, %v811_v1  ;;  %2333 = vmatprep.mubr.msk.f32.mxu1 %vm837_vm7, %v3272_v5  ;;  %2388 = vmatprep.mubr.msk.f32.mxu0 %vm837_vm7, %v3272_v5 }
  0xb7   : > { %2334 = vmatmul.mubr.msk.f32.gmra.mrb[6].mxu1 %vm837_vm7, %v3274_v57  ;;  %2389 = vmatmul.mubr.msk.f32.gmra.mrb[8].mxu0 %vm837_vm7, %v3274_v57 }
  0xb8   : > { %v483_v35 = vpop.permute.xlu1 %482  ;;  %v481_v47 = vpop.permute.xlu0 %480 }
  0xb9   : > { %v777_v9 = vsel %vm763_vm5, %v2875_v38, %v483_v35  ;;  %v776_v34 = vsel %vm763_vm5, %v2912_v43, %v481_v47 }
  0xbc   : > { %v682_v27 = vpop.permute.xlu1 %681  ;;  %v680_v62 = vpop.permute.xlu0 %679 }
  0xbd   : > { %v814_v31 = vsel %vm800_vm6, %v777_v9, %v682_v27  ;;  %v813_v15 = vsel %vm800_vm6, %v776_v34, %v680_v62  ;;  %v3292_v24 = vld [vmem:[#allocation2 + $0x50] sm:$0xff]  ;;  %v3294_v26 = vld [vmem:[#allocation2 + $0x58] sm:$0xff] }
  0xbe   : > { %851 = vst.msk [vmem:[#allocation2 + $0x68] sm:$0xff] %vm837_vm7, %v814_v31  ;;  %850 = vst.msk [vmem:[#allocation2 + $0x60] sm:$0xff] %vm837_vm7, %v813_v15  ;;  %2336 = vmatprep.mubr.msk.f32.mxu1 %vm837_vm7, %v3292_v24  ;;  %2391 = vmatprep.mubr.msk.f32.mxu0 %vm837_vm7, %v3292_v24 }
  0xbf   : > { %2337 = vmatmul.mubr.msk.f32.gmra.mrb[8].mxu1 %vm837_vm7, %v3294_v26  ;;  %2392 = vmatmul.mubr.msk.f32.gmra.mrb[10].mxu0 %vm837_vm7, %v3294_v26 }
  0xc0   : > { %v487_v43 = vpop.permute.xlu1 %486  ;;  %v485_v38 = vpop.permute.xlu0 %484 }
  0xc1   : > { %v779_v2 = vsel %vm763_vm5, %v2985_v44, %v487_v43  ;;  %v778_v10 = vsel %vm763_vm5, %v2989_v18, %v485_v38 }
  0xc4   : > { %v686_v32 = vpop.permute.xlu1 %685  ;;  %v684_v16 = vpop.permute.xlu0 %683 }
  0xc5   : > { %v816_v14 = vsel %vm800_vm6, %v779_v2, %v686_v32  ;;  %v815_v41 = vsel %vm800_vm6, %v778_v10, %v684_v16  ;;  %v886_v46 = vld [vmem:[#allocation2 + $0x60] sm:$0xff]  ;;  %v887_v36 = vld [vmem:[#allocation2 + $0x68] sm:$0xff] }
  0xc6   : > { %853 = vst.msk [vmem:[#allocation2 + $0x78] sm:$0xff] %vm837_vm7, %v816_v14  ;;  %852 = vst.msk [vmem:[#allocation2 + $0x70] sm:$0xff] %vm837_vm7, %v815_v41  ;;  %2339 = vmatprep.mubr.msk.f32.mxu1 %vm837_vm7, %v886_v46  ;;  %2394 = vmatprep.mubr.msk.f32.mxu0 %vm837_vm7, %v886_v46 }
  0xc7   : > { %2340 = vmatmul.mubr.msk.f32.gmra.mrb[10].mxu1 %vm837_vm7, %v887_v36  ;;  %2395 = vmatmul.mubr.msk.f32.gmra.mrb[12].mxu0 %vm837_vm7, %v887_v36 }
  0xc8   : > { %v491_v44 = vpop.permute.xlu1 %490  ;;  %v489_v18 = vpop.permute.xlu0 %488 }
  0xc9   : > { %v781_v33 = vsel %vm763_vm5, %v2717_v39, %v491_v44  ;;  %v780_v40 = vsel %vm763_vm5, %v3004_v51, %v489_v18 }
  0xcc   : > { %v690_v61 = vpop.permute.xlu1 %689  ;;  %v688_v25 = vpop.permute.xlu0 %687 }
  0xcd   : > { %v818_v12 = vsel %vm800_vm6, %v781_v33, %v690_v61  ;;  %v817_v19 = vsel %vm800_vm6, %v780_v40, %v688_v25  ;;  %v888_v0 = vld [vmem:[#allocation2 + $0x70] sm:$0xff]  ;;  %v889_v6 = vld [vmem:[#allocation2 + $0x78] sm:$0xff] }
  0xce   : > { %855 = vst.msk [vmem:[#allocation2 + $0x88] sm:$0xff] %vm837_vm7, %v818_v12  ;;  %854 = vst.msk [vmem:[#allocation2 + $0x80] sm:$0xff] %vm837_vm7, %v817_v19  ;;  %2342 = vmatprep.mubr.msk.f32.mxu1 %vm837_vm7, %v888_v0  ;;  %2397 = vmatprep.mubr.msk.f32.mxu0 %vm837_vm7, %v888_v0 }
  0xcf   : > { %2343 = vmatmul.mubr.msk.f32.gmra.mrb[12].mxu1 %vm837_vm7, %v889_v6  ;;  %2398 = vmatmul.mubr.msk.f32.gmra.mrb[14].mxu0 %vm837_vm7, %v889_v6 }
  0xd0   : > { %v495_v39 = vpop.permute.xlu1 %494  ;;  %2428 = vmatprep.mubr.msk.f32.mxu0 %vm837_vm7, %v3232_v7  ;;  %v493_v51 = vpop.permute.xlu0 %492 }
  0xd1   : > { %v783_v55 = vsel %vm763_vm5, %v2726_v42, %v495_v39  ;;  %v782_v4 = vsel %vm763_vm5, %v3031_v23, %v493_v51 }
  0xd3   : > { %2429 = vmatmul.mubr.msk.f32.vlgmr.msra.gmra.mrb[0].mxu0 %vm837_vm7, %v3234_v21 }
  0xd4   : > { %v694_v58 = vpop.permute.xlu1 %693  ;;  %2431 = vmatprep.mubr.msk.f32.mxu0 %vm837_vm7, %v3252_v11  ;;  %v692_v3 = vpop.permute.xlu0 %691 }
  0xd5   : > { %v820_v37 = vsel %vm800_vm6, %v783_v55, %v694_v58  ;;  %v819_v53 = vsel %vm800_vm6, %v782_v4, %v692_v3  ;;  %v3342_v7 = vld [vmem:[#allocation2 + $0x80] sm:$0xff]  ;;  %v3344_v59 = vld [vmem:[#allocation2 + $0x88] sm:$0xff] }
  0xd6   : > { %857 = vst.msk [vmem:[#allocation2 + $0x98] sm:$0xff] %vm837_vm7, %v820_v37  ;;  %856 = vst.msk [vmem:[#allocation2 + $0x90] sm:$0xff] %vm837_vm7, %v819_v53  ;;  %2345 = vmatprep.mubr.msk.f32.mxu1 %vm837_vm7, %v3342_v7 }
  0xd7   : > { %2346 = vmatmul.mubr.msk.f32.gmra.mrb[14].mxu1 %vm837_vm7, %v3344_v59  ;;  %2432 = vmatmul.mubr.msk.f32.gmra.mrb[2].mxu0 %vm837_vm7, %v3254_v30 }
  0xd8   : > { %v499_v42 = vpop.permute.xlu1 %498  ;;  %2434 = vmatprep.mubr.msk.f32.mxu0 %vm837_vm7, %v3272_v5  ;;  %v497_v23 = vpop.permute.xlu0 %496 }
  0xd9   : > { %v785_v21 = vsel %vm763_vm5, %v2739_v52, %v499_v42  ;;  %v784_v11 = vsel %vm763_vm5, %v3046_v56, %v497_v23 }
  0xdb   : > { %2435 = vmatmul.mubr.msk.f32.gmra.mrb[4].mxu0 %vm837_vm7, %v3274_v57 }
  0xdc   : > { %v698_v1 = vpop.permute.xlu1 %697  ;;  %2437 = vmatprep.mubr.msk.f32.mxu0 %vm837_vm7, %v3292_v24  ;;  %v696_v35 = vpop.permute.xlu0 %695 }
  0xdd   : > { %v822_v30 = vsel %vm800_vm6, %v785_v21, %v698_v1  ;;  %v821_v47 = vsel %vm800_vm6, %v784_v11, %v696_v35  ;;  %v3366_v5 = vld [vmem:[#allocation2 + $0x90] sm:$0xff]  ;;  %v3368_v9 = vld [vmem:[#allocation2 + $0x98] sm:$0xff] }
  0xde   : > { %859 = vst.msk [vmem:[#allocation2 + $0xa8] sm:$0xff] %vm837_vm7, %v822_v30  ;;  %858 = vst.msk [vmem:[#allocation2 + $0xa0] sm:$0xff] %vm837_vm7, %v821_v47  ;;  %2348 = vmatprep.mubr.msk.f32.mxu1 %vm837_vm7, %v3366_v5 }
  0xdf   : > { %2349 = vmatmul.mubr.msk.f32.gmra.mrb[16].mxu1 %vm837_vm7, %v3368_v9  ;;  %2438 = vmatmul.mubr.msk.f32.gmra.mrb[6].mxu0 %vm837_vm7, %v3294_v26 }
  0xe0   : > { %v503_v52 = vpop.permute.xlu1 %502  ;;  %2440 = vmatprep.mubr.msk.f32.mxu0 %vm837_vm7, %v886_v46  ;;  %v501_v56 = vpop.permute.xlu0 %500 }
  0xe1   : > { %v787_v57 = vsel %vm763_vm5, %v2759_v63, %v503_v52  ;;  %v786_v34 = vsel %vm763_vm5, %v3063_v49, %v501_v56 }
  0xe3   : > { %2441 = vmatmul.mubr.msk.f32.gmra.mrb[8].mxu0 %vm837_vm7, %v887_v36 }
  0xe4   : > { %v702_v27 = vpop.permute.xlu1 %701  ;;  %2443 = vmatprep.mubr.msk.f32.mxu0 %vm837_vm7, %v888_v0  ;;  %v700_v62 = vpop.permute.xlu0 %699 }
  0xe5   : > { %v824_v31 = vsel %vm800_vm6, %v787_v57, %v702_v27  ;;  %v823_v15 = vsel %vm800_vm6, %v786_v34, %v700_v62  ;;  %v3387_v24 = vld [vmem:[#allocation2 + $0xa0] sm:$0xff]  ;;  %v3389_v26 = vld [vmem:[#allocation2 + $0xa8] sm:$0xff] }
  0xe6   : > { %861 = vst.msk [vmem:[#allocation2 + $0xb8] sm:$0xff] %vm837_vm7, %v824_v31  ;;  %860 = vst.msk [vmem:[#allocation2 + $0xb0] sm:$0xff] %vm837_vm7, %v823_v15  ;;  %2351 = vmatprep.mubr.msk.f32.mxu1 %vm837_vm7, %v3387_v24 }
  0xe7   : > { %2352 = vmatmul.mubr.msk.f32.gmra.mrb[18].mxu1 %vm837_vm7, %v3389_v26  ;;  %2444 = vmatmul.mubr.msk.f32.gmra.mrb[10].mxu0 %vm837_vm7, %v889_v6 }
  0xe8   : > { %v507_v63 = vpop.permute.xlu1 %506  ;;  %2446 = vmatprep.mubr.msk.f32.mxu0 %vm837_vm7, %v3342_v7  ;;  %v505_v49 = vpop.permute.xlu0 %504 }
  0xe9   : > { %v789_v43 = vsel %vm763_vm5, %v2783_v17, %v507_v63  ;;  %v788_v38 = vsel %vm763_vm5, %v3080_v45, %v505_v49 }
  0xeb   : > { %2447 = vmatmul.mubr.msk.f32.gmra.mrb[12].mxu0 %vm837_vm7, %v3344_v59 }
  0xec   : > { %v706_v2 = vpop.permute.xlu1 %705  ;;  %2449 = vmatprep.mubr.msk.f32.mxu0 %vm837_vm7, %v3366_v5  ;;  %v704_v10 = vpop.permute.xlu0 %703 }
  0xed   : > { %v826_v32 = vsel %vm800_vm6, %v789_v43, %v706_v2  ;;  %v825_v16 = vsel %vm800_vm6, %v788_v38, %v704_v10  ;;  %v3410_v14 = vld [vmem:[#allocation2 + $0xb0] sm:$0xff]  ;;  %v3412_v41 = vld [vmem:[#allocation2 + $0xb8] sm:$0xff] }
  0xee   : > { %863 = vst.msk [vmem:[#allocation2 + $0xc8] sm:$0xff] %vm837_vm7, %v826_v32  ;;  %862 = vst.msk [vmem:[#allocation2 + $0xc0] sm:$0xff] %vm837_vm7, %v825_v16  ;;  %2354 = vmatprep.mubr.msk.f32.mxu1 %vm837_vm7, %v3410_v14 }
  0xef   : > { %2355 = vmatmul.mubr.msk.f32.gmra.mrb[20].mxu1 %vm837_vm7, %v3412_v41  ;;  %2450 = vmatmul.mubr.msk.f32.gmra.mrb[14].mxu0 %vm837_vm7, %v3368_v9 }
  0xf0   : > { %v511_v17 = vpop.permute.xlu1 %510  ;;  %2452 = vmatprep.mubr.msk.f32.mxu0 %vm837_vm7, %v3387_v24  ;;  %v509_v45 = vpop.permute.xlu0 %508 }
  0xf1   : > { %v791_v46 = vsel %vm763_vm5, %v2803_v29, %v511_v17  ;;  %v790_v36 = vsel %vm763_vm5, %v3097_v48, %v509_v45 }
  0xf3   : > { %2453 = vmatmul.mubr.msk.f32.gmra.mrb[16].mxu0 %vm837_vm7, %v3389_v26 }
  0xf4   : > { %v710_v44 = vpop.permute.xlu1 %709  ;;  %2455 = vmatprep.mubr.msk.f32.mxu0 %vm837_vm7, %v3410_v14  ;;  %v708_v18 = vpop.permute.xlu0 %707 }
  0xf5   : > { %v828_v33 = vsel %vm800_vm6, %v791_v46, %v710_v44  ;;  %v827_v40 = vsel %vm800_vm6, %v790_v36, %v708_v18  ;;  %v3434_v61 = vld [vmem:[#allocation2 + $0xc0] sm:$0xff]  ;;  %v3436_v25 = vld [vmem:[#allocation2 + $0xc8] sm:$0xff] }
  0xf6   : > { %865 = vst.msk [vmem:[#allocation2 + $0xd8] sm:$0xff] %vm837_vm7, %v828_v33  ;;  %864 = vst.msk [vmem:[#allocation2 + $0xd0] sm:$0xff] %vm837_vm7, %v827_v40  ;;  %2357 = vmatprep.mubr.msk.f32.mxu1 %vm837_vm7, %v3434_v61  ;;  %v3543_v36 = vld [vmem:[%s3669_s2] ss:$0 sm:$0xff] }
  0xf7   : > { %2358 = vmatmul.mubr.msk.f32.gmra.mrb[22].mxu1 %vm837_vm7, %v3436_v25  ;;  %2456 = vmatmul.mubr.msk.f32.gmra.mrb[18].mxu0 %vm837_vm7, %v3412_v41 }
  0xf8   : > { %v515_v29 = vpop.permute.xlu1 %514  ;;  %2458 = vmatprep.mubr.msk.f32.mxu0 %vm837_vm7, %v3434_v61  ;;  %v513_v48 = vpop.permute.xlu0 %512 }
  0xf9   : > { %v793_v12 = vsel %vm763_vm5, %v2834_v50, %v515_v29  ;;  %v792_v19 = vsel %vm763_vm5, %v3114_v28, %v513_v48 }
  0xfb   : > { %2459 = vmatmul.mubr.msk.f32.gmra.mrb[20].mxu0 %vm837_vm7, %v3436_v25 }
  0xfc   : > { %v714_v0 = vpop.permute.xlu1 %713  ;;  %v712_v6 = vpop.permute.xlu0 %711 }
  0xfd   : > { %v830_v39 = vsel %vm800_vm6, %v793_v12, %v714_v0  ;;  %v829_v51 = vsel %vm800_vm6, %v792_v19, %v712_v6  ;;  %v3456_v55 = vld [vmem:[#allocation2 + $0xd0] sm:$0xff]  ;;  %v3458_v4 = vld [vmem:[#allocation2 + $0xd8] sm:$0xff] }
  0xfe   : > { %867 = vst.msk [vmem:[#allocation2 + $0xe8] sm:$0xff] %vm837_vm7, %v830_v39  ;;  %866 = vst.msk [vmem:[#allocation2 + $0xe0] sm:$0xff] %vm837_vm7, %v829_v51  ;;  %2360 = vmatprep.mubr.msk.f32.mxu1 %vm837_vm7, %v3456_v55  ;;  %2461 = vmatprep.mubr.msk.f32.mxu0 %vm837_vm7, %v3456_v55 }
  0xff   : > { %2361 = vmatmul.mubr.msk.f32.gmra.mrb[24].mxu1 %vm837_vm7, %v3458_v4  ;;  %2462 = vmatmul.mubr.msk.f32.gmra.mrb[22].mxu0 %vm837_vm7, %v3458_v4 }
 0x100   : > { %v519_v50 = vpop.permute.xlu1 %518  ;;  %v517_v28 = vpop.permute.xlu0 %516 }
 0x101   : > { %v795_v58 = vsel %vm763_vm5, %v2852_v8, %v519_v50  ;;  %v794_v3 = vsel %vm763_vm5, %v3131_v20, %v517_v28 }
 0x104   : > { %v718_v37 = vpop.permute.xlu1 %717  ;;  %v716_v53 = vpop.permute.xlu0 %715 }
 0x105   : > { %v832_v42 = vsel %vm800_vm6, %v795_v58, %v718_v37  ;;  %v831_v23 = vsel %vm800_vm6, %v794_v3, %v716_v53  ;;  %v902_v21 = vld [vmem:[#allocation2 + $0xe0] sm:$0xff]  ;;  %v903_v11 = vld [vmem:[#allocation2 + $0xe8] sm:$0xff] }
 0x106   : > { %869 = vst.msk [vmem:[#allocation2 + $0xf8] sm:$0xff] %vm837_vm7, %v832_v42  ;;  %868 = vst.msk [vmem:[#allocation2 + $0xf0] sm:$0xff] %vm837_vm7, %v831_v23  ;;  %2363 = vmatprep.mubr.msk.f32.mxu1 %vm837_vm7, %v902_v21  ;;  %2464 = vmatprep.mubr.msk.f32.mxu0 %vm837_vm7, %v902_v21 }
 0x107   : > { %2364 = vmatmul.mubr.msk.f32.gmra.mrb[26].mxu1 %vm837_vm7, %v903_v11  ;;  %2465 = vmatmul.mubr.msk.f32.gmra.mrb[24].mxu0 %vm837_vm7, %v903_v11 }
 0x108   : > { %v523_v8 = vpop.permute.xlu1 %522  ;;  %v521_v20 = vpop.permute.xlu0 %520 }
 0x109   : > { %v797_v1 = vsel %vm763_vm5, %v2879_v54, %v523_v8  ;;  %v796_v35 = vsel %vm763_vm5, %v3148_v22, %v521_v20 }
 0x10c   : > { %v722_v30 = vpop.permute.xlu1 %721  ;;  %v720_v47 = vpop.permute.xlu0 %719 }
 0x10d   : > { %v834_v52 = vsel %vm800_vm6, %v797_v1, %v722_v30  ;;  %v833_v56 = vsel %vm800_vm6, %v796_v35, %v720_v47  ;;  %v904_v57 = vld [vmem:[#allocation2 + $0xf0] sm:$0xff]  ;;  %v905_v34 = vld [vmem:[#allocation2 + $0xf8] sm:$0xff] }
 0x10e   : > { %871 = vst.msk [vmem:[#allocation2 + $0x108] sm:$0xff] %vm837_vm7, %v834_v52  ;;  %870 = vst.msk [vmem:[#allocation2 + $0x100] sm:$0xff] %vm837_vm7, %v833_v56  ;;  %2366 = vmatprep.mubr.msk.f32.mxu1 %vm837_vm7, %v904_v57  ;;  %2467 = vmatprep.mubr.msk.f32.mxu0 %vm837_vm7, %v904_v57 }
 0x10f   : > { %2367 = vmatmul.mubr.msk.f32.gmra.mrb[28].mxu1 %vm837_vm7, %v905_v34  ;;  %2468 = vmatmul.mubr.msk.f32.gmra.mrb[26].mxu0 %vm837_vm7, %v905_v34 }
 0x111   : > { %v525_v54 = vpop.permute.xlu0 %524 }
 0x112   : > { %v527_v22 = vpop.permute.xlu1 %526  ;;  %v798_v27 = vsel %vm763_vm5, %v3179_v13, %v525_v54 }
 0x113   : > { %v799_v62 = vsel %vm763_vm5, %v2927_v60, %v527_v22 }
 0x115   : > { %v908_v31 = vld [vmem:[#allocation2 + $0x100] sm:$0xff]  ;;  %v909_v15 = vld [vmem:[#allocation2 + $0x108] sm:$0xff]  ;;  %v724_v63 = vpop.permute.xlu0 %723 }
 0x116   : > { %2369 = vmatprep.mubr.msk.f32.mxu1 %vm837_vm7, %v908_v31  ;;  %2470 = vmatprep.mubr.msk.f32.mxu0 %vm837_vm7, %v908_v31  ;;  %v835_v49 = vsel %vm800_vm6, %v798_v27, %v724_v63  ;;  %v726_v43 = vpop.permute.xlu1 %725 }
 0x117   : > { %2370 = vmatmul.mubr.msk.f32.gmra.mrb[30].mxu1 %vm837_vm7, %v909_v15  ;;  %2471 = vmatmul.mubr.msk.f32.gmra.mrb[28].mxu0 %vm837_vm7, %v909_v15  ;;  %872 = vst.msk [vmem:[#allocation2 + $0x110] sm:$0xff] %vm837_vm7, %v835_v49  ;;  %v836_v13 = vsel %vm800_vm6, %v799_v62, %v726_v43 }
 0x118   : > { %2400 = vmatprep.mubr.msk.f32.mxu1 %vm837_vm7, %v3342_v7  ;;  %873 = vst.msk [vmem:[#allocation2 + $0x118] sm:$0xff] %vm837_vm7, %v836_v13 }
 0x11b   : > { %2401 = vmatmul.mubr.msk.f32.vlgmr.msra.gmra.mrb[16].mxu1 %vm837_vm7, %v3344_v59 }
 0x11c   : > { %2403 = vmatprep.mubr.msk.f32.mxu1 %vm837_vm7, %v3366_v5 }
 0x11e   : > { %v1503_v60 = vld [vmem:[#allocation2 + $0x110] sm:$0xff] }
 0x11f   : > { %2404 = vmatmul.mubr.msk.f32.gmra.mrb[18].mxu1 %vm837_vm7, %v3368_v9  ;;  %2473 = vmatprep.mubr.msk.f32.mxu0 %vm837_vm7, %v1503_v60  ;;  %v1504_v38 = vld [vmem:[#allocation2 + $0x118] sm:$0xff] }
 0x120   : > { %2406 = vmatprep.mubr.msk.f32.mxu1 %vm837_vm7, %v3387_v24  ;;  %2474 = vmatmul.mubr.msk.f32.gmra.mrb[30].mxu0 %vm837_vm7, %v1504_v38 }
 0x123   : > { %2407 = vmatmul.mubr.msk.f32.gmra.mrb[20].mxu1 %vm837_vm7, %v3389_v26 }
 0x124   : > { %2409 = vmatprep.mubr.msk.f32.mxu1 %vm837_vm7, %v3410_v14 }
 0x127   : > { %2410 = vmatmul.mubr.msk.f32.gmra.mrb[22].mxu1 %vm837_vm7, %v3412_v41 }
 0x128   : > { %2412 = vmatprep.mubr.msk.f32.mxu1 %vm837_vm7, %v3434_v61 }
 0x12b   : > { %2413 = vmatmul.mubr.msk.f32.gmra.mrb[24].mxu1 %vm837_vm7, %v3436_v25 }
 0x12c   : > { %2415 = vmatprep.mubr.msk.f32.mxu1 %vm837_vm7, %v3456_v55 }
 0x12f   : > { %2416 = vmatmul.mubr.msk.f32.gmra.mrb[26].mxu1 %vm837_vm7, %v3458_v4 }
 0x130   : > { %2418 = vmatprep.mubr.msk.f32.mxu1 %vm837_vm7, %v902_v21 }
 0x133   : > { %2419 = vmatmul.mubr.msk.f32.gmra.mrb[28].mxu1 %vm837_vm7, %v903_v11 }
 0x134   : > { %2421 = vmatprep.mubr.msk.f32.mxu1 %vm837_vm7, %v904_v57 }
 0x137   : > { %2422 = vmatmul.mubr.msk.f32.gmra.mrb[30].mxu1 %vm837_vm7, %v905_v34 }
 0x171   : > { %v2326_v7 = vpop.f32.mrb[0].mxu1 }
 0x172   : > { %v1080_v59 = vpop.f32.mrb[1].mxu1 }
 0x17a   : > { %v2329_v5 = vpop.f32.mrb[2].mxu1 }
 0x17b   : > { %v1090_v9 = vpop.f32.mrb[3].mxu1 }
 0x182   : > { %v2332_v24 = vpop.f32.mrb[4].mxu1 }
 0x183   : > { %v1100_v26 = vpop.f32.mrb[5].mxu1 }
 0x18a   : > { %v2335_v2 = vpop.f32.mrb[6].mxu1 }
 0x18b   : > { %v1110_v10 = vpop.f32.mrb[7].mxu1 }
 0x192   : > { %v2338_v32 = vpop.f32.mrb[8].mxu1 }
 0x193   : > { %v1120_v16 = vpop.f32.mrb[9].mxu1 }
 0x19a   : > { %v2341_v14 = vpop.f32.mrb[10].mxu1 }
 0x19b   : > { %v1130_v41 = vpop.f32.mrb[11].mxu1 }
 0x1a2   : > { %v3536_v17 = vpop.f32.mrb[12].mxu1 }
 0x1a3   : > { %v3538_v45 = vpop.f32.mrb[13].mxu1 }
 0x1a6   : > { %v2430_v46 = vpop.f32.mrb[0].mxu0 }
 0x1a7   : > { %v2496_v44 = vadd.f32 %v2430_v46, %v2326_v7  ;;  %v1673_v18 = vpop.f32.mrb[1].mxu0 }
 0x1a8   : > { %v2497_v33 = vadd.f32 %v1673_v18, %v1080_v59 }
 0x1a9   : > { %v1872_v40 = vadd.f32 %v2496_v44, %v3543_v36 }
 0x1aa   : > { %v1871_v61 = vadd.f32 %v2497_v33, %v3543_v36  ;;  %v3553_v25 = vpop.f32.mrb[14].mxu1  ;;  %v2433_v29 = vpop.f32.mrb[2].mxu0 }
 0x1ab   : > { %v1904_v48 = vmax.f32 %v1872_v40, 0.0  ;;  %v2498_v12 = vadd.f32 %v2433_v29, %v2329_v5  ;;  %v3555_v19 = vpop.f32.mrb[15].mxu1  ;;  %v1683_v0 = vpop.f32.mrb[3].mxu0 }
 0x1ac   : > { %v1903_v6 = vmax.f32 %v1871_v61, 0.0  ;;  %v2499_v39 = vadd.f32 %v1683_v0, %v1090_v9 }
 0x1ad   : > { %1937 = vst.msk [vmem:[%s3550_s16 + $0x8] sm:$0xff] %vm763_vm5, %v1904_v48  ;;  %v1874_v51 = vadd.f32 %v2498_v12, %v3543_v36 }
 0x1ae   : > { %1936 = vst.msk [vmem:[%s3550_s16] sm:$0xff] %vm763_vm5, %v1903_v6  ;;  %v1873_v55 = vadd.f32 %v2499_v39, %v3543_v36  ;;  %v2436_v4 = vpop.f32.mrb[4].mxu0 }
 0x1af   : > { %v1906_v50 = vmax.f32 %v1874_v51, 0.0  ;;  %v2500_v28 = vadd.f32 %v2436_v4, %v2332_v24  ;;  %v1693_v58 = vpop.f32.mrb[5].mxu0 }
 0x1b0   : > { %v1905_v3 = vmax.f32 %v1873_v55, 0.0  ;;  %v2501_v37 = vadd.f32 %v1693_v58, %v1100_v26 }
 0x1b1   : > { %1939 = vst.msk [vmem:[%s3550_s16 + $0x18] sm:$0xff] %vm763_vm5, %v1906_v50  ;;  %v1876_v53 = vadd.f32 %v2500_v28, %v3543_v36 }
 0x1b2   : > { %1938 = vst.msk [vmem:[%s3550_s16 + $0x10] sm:$0xff] %vm763_vm5, %v1905_v3  ;;  %v1875_v42 = vadd.f32 %v2501_v37, %v3543_v36  ;;  %v2439_v23 = vpop.f32.mrb[6].mxu0 }
 0x1b3   : > { %v1908_v21 = vmax.f32 %v1876_v53, 0.0  ;;  %v2502_v11 = vadd.f32 %v2439_v23, %v2335_v2  ;;  %v1703_v8 = vpop.f32.mrb[7].mxu0 }
 0x1b4   : > { %v1907_v20 = vmax.f32 %v1875_v42, 0.0  ;;  %v2503_v1 = vadd.f32 %v1703_v8, %v1110_v10 }
 0x1b5   : > { %1941 = vst.msk [vmem:[%s3550_s16 + $0x28] sm:$0xff] %vm763_vm5, %v1908_v21  ;;  %v1878_v35 = vadd.f32 %v2502_v11, %v3543_v36 }
 0x1b6   : > { %1940 = vst.msk [vmem:[%s3550_s16 + $0x20] sm:$0xff] %vm763_vm5, %v1907_v20  ;;  %v1877_v30 = vadd.f32 %v2503_v1, %v3543_v36  ;;  %v2442_v47 = vpop.f32.mrb[8].mxu0 }
 0x1b7   : > { %v1910_v52 = vmax.f32 %v1878_v35, 0.0  ;;  %v2504_v56 = vadd.f32 %v2442_v47, %v2338_v32  ;;  %v1713_v57 = vpop.f32.mrb[9].mxu0 }
 0x1b8   : > { %v1909_v34 = vmax.f32 %v1877_v30, 0.0  ;;  %v2505_v54 = vadd.f32 %v1713_v57, %v1120_v16 }
 0x1b9   : > { %1943 = vst.msk [vmem:[%s3550_s16 + $0x38] sm:$0xff] %vm763_vm5, %v1910_v52  ;;  %v1880_v22 = vadd.f32 %v2504_v56, %v3543_v36 }
 0x1ba   : > { %1942 = vst.msk [vmem:[%s3550_s16 + $0x30] sm:$0xff] %vm763_vm5, %v1909_v34  ;;  %v1879_v27 = vadd.f32 %v2505_v54, %v3543_v36  ;;  %v2445_v62 = vpop.f32.mrb[10].mxu0 }
 0x1bb   : > { %v1912_v31 = vmax.f32 %v1880_v22, 0.0  ;;  %v2506_v15 = vadd.f32 %v2445_v62, %v2341_v14  ;;  %v1723_v63 = vpop.f32.mrb[11].mxu0 }
 0x1bc   : > { %v1911_v49 = vmax.f32 %v1879_v27, 0.0  ;;  %v2507_v43 = vadd.f32 %v1723_v63, %v1130_v41 }
 0x1bd   : > { %1945 = vst.msk [vmem:[%s3550_s16 + $0x48] sm:$0xff] %vm763_vm5, %v1912_v31  ;;  %v1882_v13 = vadd.f32 %v2506_v15, %v3543_v36 }
 0x1be   : > { %1944 = vst.msk [vmem:[%s3550_s16 + $0x40] sm:$0xff] %vm763_vm5, %v1911_v49  ;;  %v1881_v60 = vadd.f32 %v2507_v43, %v3543_v36  ;;  %v2448_v38 = vpop.f32.mrb[12].mxu0 }
 0x1bf   : > { %v1914_v7 = vmax.f32 %v1882_v13, 0.0  ;;  %v2508_v59 = vadd.f32 %v2448_v38, %v3536_v17  ;;  %v1733_v5 = vpop.f32.mrb[13].mxu0 }
 0x1c0   : > { %v1913_v9 = vmax.f32 %v1881_v60, 0.0  ;;  %v2509_v24 = vadd.f32 %v1733_v5, %v3538_v45 }
 0x1c1   : > { %1947 = vst.msk [vmem:[%s3550_s16 + $0x58] sm:$0xff] %vm763_vm5, %v1914_v7  ;;  %v1884_v26 = vadd.f32 %v2508_v59, %v3543_v36 }
 0x1c2   : > { %1946 = vst.msk [vmem:[%s3550_s16 + $0x50] sm:$0xff] %vm763_vm5, %v1913_v9  ;;  %v1883_v2 = vadd.f32 %v2509_v24, %v3543_v36  ;;  %v2451_v10 = vpop.f32.mrb[14].mxu0 }
 0x1c3   : > { %v1916_v32 = vmax.f32 %v1884_v26, 0.0  ;;  %v2510_v16 = vadd.f32 %v2451_v10, %v3553_v25  ;;  %v1743_v14 = vpop.f32.mrb[15].mxu0 }
 0x1c4   : > { %v1915_v41 = vmax.f32 %v1883_v2, 0.0  ;;  %v2511_v17 = vadd.f32 %v1743_v14, %v3555_v19 }
 0x1c5   : > { %1949 = vst.msk [vmem:[%s3550_s16 + $0x68] sm:$0xff] %vm763_vm5, %v1916_v32  ;;  %v1886_v45 = vadd.f32 %v2510_v16, %v3543_v36 }
 0x1c6   : > { %1948 = vst.msk [vmem:[%s3550_s16 + $0x60] sm:$0xff] %vm763_vm5, %v1915_v41  ;;  %v1885_v46 = vadd.f32 %v2511_v17, %v3543_v36  ;;  %v2454_v44 = vpop.f32.mrb[16].mxu0 }
 0x1c7   : > { %v1918_v18 = vmax.f32 %v1886_v45, 0.0  ;;  %v1753_v33 = vpop.f32.mrb[17].mxu0 }
 0x1c8   : > { %v1917_v40 = vmax.f32 %v1885_v46, 0.0 }
 0x1c9   : > { %1951 = vst.msk [vmem:[%s3550_s16 + $0x78] sm:$0xff] %vm763_vm5, %v1918_v18 }
 0x1ca   : > { %1950 = vst.msk [vmem:[%s3550_s16 + $0x70] sm:$0xff] %vm763_vm5, %v1917_v40  ;;  %v2457_v61 = vpop.f32.mrb[18].mxu0 }
 0x1cb   : > { %v1763_v25 = vpop.f32.mrb[19].mxu0 }
 0x1ce   : > { %v2460_v29 = vpop.f32.mrb[20].mxu0 }
 0x1cf   : > { %v1773_v48 = vpop.f32.mrb[21].mxu0 }
 0x1d2   : > { %v2463_v12 = vpop.f32.mrb[22].mxu0 }
 0x1d3   : > { %v1783_v19 = vpop.f32.mrb[23].mxu0 }
 0x1da   : > { %v2466_v0 = vpop.f32.mrb[24].mxu0 }
 0x1db   : > { %v1793_v6 = vpop.f32.mrb[25].mxu0 }
 0x1e2   : > { %v2469_v39 = vpop.f32.mrb[26].mxu0 }
 0x1e3   : > { %v1803_v51 = vpop.f32.mrb[27].mxu0 }
 0x1ea   : > { %v2472_v55 = vpop.f32.mrb[28].mxu0 }
 0x1eb   : > { %v3607_v4 = vpop.f32.mrb[29].mxu0 }
 0x1ee   : > { %v2402_v50 = vpop.f32.mrb[16].mxu1 }
 0x1ef   : > { %v2512_v28 = vadd.f32 %v2454_v44, %v2402_v50  ;;  %v1394_v58 = vpop.f32.mrb[17].mxu1 }
 0x1f0   : > { %v2513_v3 = vadd.f32 %v1753_v33, %v1394_v58 }
 0x1f1   : > { %v1888_v37 = vadd.f32 %v2512_v28, %v3543_v36 }
 0x1f2   : > { %v1887_v53 = vadd.f32 %v2513_v3, %v3543_v36  ;;  %v2405_v42 = vpop.f32.mrb[18].mxu1 }
 0x1f3   : > { %v1920_v23 = vmax.f32 %v1888_v37, 0.0  ;;  %v2514_v21 = vadd.f32 %v2457_v61, %v2405_v42  ;;  %v1404_v11 = vpop.f32.mrb[19].mxu1  ;;  %v2475_v8 = vpop.f32.mrb[30].mxu0 }
 0x1f4   : > { %v1919_v20 = vmax.f32 %v1887_v53, 0.0  ;;  %v2515_v1 = vadd.f32 %v1763_v25, %v1404_v11  ;;  %v1823_v35 = vpop.f32.mrb[31].mxu0 }
 0x1f5   : > { %1953 = vst.msk [vmem:[%s3550_s16 + $0x88] sm:$0xff] %vm763_vm5, %v1920_v23  ;;  %v1890_v30 = vadd.f32 %v2514_v21, %v3543_v36 }
 0x1f6   : > { %1952 = vst.msk [vmem:[%s3550_s16 + $0x80] sm:$0xff] %vm763_vm5, %v1919_v20  ;;  %v1889_v47 = vadd.f32 %v2515_v1, %v3543_v36  ;;  %v2408_v52 = vpop.f32.mrb[20].mxu1 }
 0x1f7   : > { %v1922_v56 = vmax.f32 %v1890_v30, 0.0  ;;  %v2516_v57 = vadd.f32 %v2460_v29, %v2408_v52  ;;  %v1414_v34 = vpop.f32.mrb[21].mxu1 }
 0x1f8   : > { %v1921_v54 = vmax.f32 %v1889_v47, 0.0  ;;  %v2517_v22 = vadd.f32 %v1773_v48, %v1414_v34 }
 0x1f9   : > { %1955 = vst.msk [vmem:[%s3550_s16 + $0x98] sm:$0xff] %vm763_vm5, %v1922_v56  ;;  %v1892_v27 = vadd.f32 %v2516_v57, %v3543_v36 }
 0x1fa   : > { %1954 = vst.msk [vmem:[%s3550_s16 + $0x90] sm:$0xff] %vm763_vm5, %v1921_v54  ;;  %v1891_v62 = vadd.f32 %v2517_v22, %v3543_v36  ;;  %v2411_v31 = vpop.f32.mrb[22].mxu1 }
 0x1fb   : > { %v1924_v15 = vmax.f32 %v1892_v27, 0.0  ;;  %v2518_v63 = vadd.f32 %v2463_v12, %v2411_v31  ;;  %v1424_v49 = vpop.f32.mrb[23].mxu1 }
 0x1fc   : > { %v1923_v43 = vmax.f32 %v1891_v62, 0.0  ;;  %v2519_v13 = vadd.f32 %v1783_v19, %v1424_v49 }
 0x1fd   : > { %1957 = vst.msk [vmem:[%s3550_s16 + $0xa8] sm:$0xff] %vm763_vm5, %v1924_v15  ;;  %v1894_v60 = vadd.f32 %v2518_v63, %v3543_v36 }
 0x1fe   : > { %1956 = vst.msk [vmem:[%s3550_s16 + $0xa0] sm:$0xff] %vm763_vm5, %v1923_v43  ;;  %v1893_v38 = vadd.f32 %v2519_v13, %v3543_v36  ;;  %v2414_v7 = vpop.f32.mrb[24].mxu1 }
 0x1ff   : > { %v1926_v59 = vmax.f32 %v1894_v60, 0.0  ;;  %v2520_v5 = vadd.f32 %v2466_v0, %v2414_v7  ;;  %v1434_v9 = vpop.f32.mrb[25].mxu1 }
 0x200   : > { %v1925_v24 = vmax.f32 %v1893_v38, 0.0  ;;  %v2521_v26 = vadd.f32 %v1793_v6, %v1434_v9 }
 0x201   : > { %1959 = vst.msk [vmem:[%s3550_s16 + $0xb8] sm:$0xff] %vm763_vm5, %v1926_v59  ;;  %v1896_v2 = vadd.f32 %v2520_v5, %v3543_v36 }
 0x202   : > { %1958 = vst.msk [vmem:[%s3550_s16 + $0xb0] sm:$0xff] %vm763_vm5, %v1925_v24  ;;  %v1895_v10 = vadd.f32 %v2521_v26, %v3543_v36  ;;  %v2417_v32 = vpop.f32.mrb[26].mxu1 }
 0x203   : > { %v1928_v16 = vmax.f32 %v1896_v2, 0.0  ;;  %v2522_v14 = vadd.f32 %v2469_v39, %v2417_v32  ;;  %v1444_v41 = vpop.f32.mrb[27].mxu1 }
 0x204   : > { %v1927_v17 = vmax.f32 %v1895_v10, 0.0  ;;  %v2523_v45 = vadd.f32 %v1803_v51, %v1444_v41 }
 0x205   : > { %1961 = vst.msk [vmem:[%s3550_s16 + $0xc8] sm:$0xff] %vm763_vm5, %v1928_v16  ;;  %v1898_v46 = vadd.f32 %v2522_v14, %v3543_v36 }
 0x206   : > { %1960 = vst.msk [vmem:[%s3550_s16 + $0xc0] sm:$0xff] %vm763_vm5, %v1927_v17  ;;  %v1897_v44 = vadd.f32 %v2523_v45, %v3543_v36  ;;  %v2420_v18 = vpop.f32.mrb[28].mxu1 }
 0x207   : > { %v1930_v33 = vmax.f32 %v1898_v46, 0.0  ;;  %v2524_v40 = vadd.f32 %v2472_v55, %v2420_v18  ;;  %v1454_v61 = vpop.f32.mrb[29].mxu1 }
 0x208   : > { %v1929_v25 = vmax.f32 %v1897_v44, 0.0  ;;  %v2525_v29 = vadd.f32 %v3607_v4, %v1454_v61 }
 0x209   : > { %1963 = vst.msk [vmem:[%s3550_s16 + $0xd8] sm:$0xff] %vm763_vm5, %v1930_v33  ;;  %v1900_v48 = vadd.f32 %v2524_v40, %v3543_v36 }
 0x20a   : > { %1962 = vst.msk [vmem:[%s3550_s16 + $0xd0] sm:$0xff] %vm763_vm5, %v1929_v25  ;;  %v1899_v12 = vadd.f32 %v2525_v29, %v3543_v36  ;;  %v2423_v19 = vpop.f32.mrb[30].mxu1 }
 0x20b   : > { %v1932_v0 = vmax.f32 %v1900_v48, 0.0  ;;  %v2526_v6 = vadd.f32 %v2475_v8, %v2423_v19  ;;  %v1464_v39 = vpop.f32.mrb[31].mxu1 }
 0x20c   : > { %v1931_v51 = vmax.f32 %v1899_v12, 0.0  ;;  %v2527_v55 = vadd.f32 %v1823_v35, %v1464_v39 }
 0x20d   : > { %1965 = vst.msk [vmem:[%s3550_s16 + $0xe8] sm:$0xff] %vm763_vm5, %v1932_v0  ;;  %v1902_v4 = vadd.f32 %v2526_v6, %v3543_v36 }
 0x20e   : > { %1964 = vst.msk [vmem:[%s3550_s16 + $0xe0] sm:$0xff] %vm763_vm5, %v1931_v51  ;;  %v1901_v50 = vadd.f32 %v2527_v55, %v3543_v36 }
 0x20f   : > { %v1934_v28 = vmax.f32 %v1902_v4, 0.0 }
 0x210   : > { %v1933_v58 = vmax.f32 %v1901_v50, 0.0 }
 0x211   : > { %1967 = vst.msk [vmem:[%s3550_s16 + $0xf8] sm:$0xff] %vm763_vm5, %v1934_v28 }
 0x212   : > { %1966 = vst.msk [vmem:[%s3550_s16 + $0xf0] sm:$0xff] %vm763_vm5, %v1933_v58 }
 0x213 PF: > { %s13_s14 = sadd.s32 1, %s2610_s14   ;;  %s3709_s12 = smov %s2606_s13 }
 0x214   : > { %p10_p5 = scmp.ge.s32.totalorder %s13_s14, 4   ;;  %s3710_s13 = smov %s3712_s15 }
 0x216   :  { %12 = sbr.rel (!%p10_p5) target bundleno = 2 (0x2), region = 74 }

</bundles_post_ra>
